<compile_context>
chip_gen: v7x
topology: tpu7x:2x2x1
jax: 0.10.0
libtpu: 0.0.40
codegen_flags: <defaults>
</compile_context>

<pallas_src>
import functools
import math

import jax
import jax.numpy as jnp
from jax.experimental import pallas as pl
from jax.experimental.pallas import tpu as pltpu

# ----------------------------- hyper params ---------------------------------
B, N, NODE_DIM = 2, 8, 6          # batch, graph_size, node feature dim
E, H, FF = 32, 4, 64              # embed_dim, n_heads, feed_forward_hidden
DK = E // H                       # key_dim == val_dim
N_LAYERS = 2
BN_EPS = 1e-5
MASK_FILL = -1e11                 # -100000000000.0 in the PyTorch code


# ------------------------------ fused kernel ---------------------------------
def _encoder_kernel(x_ref, mask_ref, ew_ref, eb_ref,
                    wq_ref, wk_ref, wv_ref, wo_ref,
                    g1_ref, be1_ref, w1_ref, b1_ref, w2_ref, b2_ref,
                    g2_ref, be2_ref,
                    out_ref, mean_ref,
                    *, n_layers, n_heads, head_dim, norm_factor):
    f32 = jnp.float32

    # ---- initial embedding: h = x @ W_e + b_e                      (B, N, E)
    x = x_ref[...].astype(f32)
    h = jnp.einsum('bnd,de->bne', x, ew_ref[...],
                   preferred_element_type=f32) + eb_ref[0]

    # ---- mask handling, hoisted out of the layer & head loops -------------
    mask_f = mask_ref[...]                       # (B, N, N) f32, 1.0 == masked
    bias = mask_f * f32(MASK_FILL)               # additive score bias
    keep = f32(1.0) - mask_f                     # multiplicative keep-mask

    # per-head 0/1 lane selectors over the concatenated head dim    (1, H*DK)
    lane = jax.lax.broadcasted_iota(jnp.int32, (1, n_heads * head_dim), 1)
    sels = [
        jnp.where((lane >= hd * head_dim) & (lane < (hd + 1) * head_dim),
                  f32(1.0), f32(0.0))
        for hd in range(n_heads)
    ]

    for li in range(n_layers):                   # unrolled (N_LAYERS static)
        # ------------- multi-head attention, fused lane-dense projections --
        q_all = jnp.einsum('bne,ed->bnd', h, wq_ref[li], preferred_element_type=f32)
        k_all = jnp.einsum('bne,ed->bnd', h, wk_ref[li], preferred_element_type=f32)
        v_all = jnp.einsum('bne,ed->bnd', h, wv_ref[li], preferred_element_type=f32)

        heads = jnp.zeros_like(q_all)            # (B, N, H*DK), head-major lanes
        for hd in range(n_heads):
            sel = sels[hd]
            # masking Q's lanes restricts the contraction to this head's slice
            compat = norm_factor * jnp.einsum('bqd,bkd->bqk', q_all * sel, k_all,
                                              preferred_element_type=f32) + bias
            m = jnp.max(compat, axis=-1, keepdims=True)
            e = jnp.exp(compat - m)
            s = jnp.sum(e, axis=-1, keepdims=True)          # >= 1, never zero
            attn = e * keep * pl.reciprocal(s, approx=False)
            # masking V's lanes drops this head's result into its lane block
            heads = heads + jnp.einsum('bqk,bkd->bqd', attn, v_all * sel,
                                       preferred_element_type=f32)

        mha = jnp.einsum('bnd,de->bne', heads, wo_ref[li],
                         preferred_element_type=f32)
        h1 = h + mha                             # skip connection

        # ------------- BatchNorm1d over flattened (B*N, E), batch stats ----
        mu1 = jnp.mean(h1, axis=(0, 1), keepdims=True)
        var1 = jnp.mean((h1 - mu1) ** 2, axis=(0, 1), keepdims=True)
        h1n = (h1 - mu1) * jax.lax.rsqrt(var1 + BN_EPS) * g1_ref[li] + be1_ref[li]

        # ------------- feed-forward + skip ----------------------------------
        z = jnp.einsum('bne,ef->bnf', h1n, w1_ref[li],
                       preferred_element_type=f32) + b1_ref[li]
        z = jnp.maximum(z, f32(0.0))
        ff = jnp.einsum('bnf,fe->bne', z, w2_ref[li],
                        preferred_element_type=f32) + b2_ref[li]
        h2 = h1n + ff

        # ------------- second BatchNorm --------------------------------------
        mu2 = jnp.mean(h2, axis=(0, 1), keepdims=True)
        var2 = jnp.mean((h2 - mu2) ** 2, axis=(0, 1), keepdims=True)
        h = (h2 - mu2) * jax.lax.rsqrt(var2 + BN_EPS) * g2_ref[li] + be2_ref[li]

    # only the final h / mean are emitted (intermediate means were dead work)
    out_ref[...] = h.astype(out_ref.dtype)
    mean_ref[...] = jnp.mean(h, axis=1).astype(mean_ref.dtype)


# ------------------------------ wrapper --------------------------------------
_VMEM = pl.BlockSpec(memory_space=pltpu.MemorySpace.VMEM)


def _transformer_encoder(x, mask_f32, packed):
    kern = functools.partial(_encoder_kernel, n_layers=N_LAYERS, n_heads=H,
                             head_dim=DK, norm_factor=1.0 / math.sqrt(DK))
    b, n, _ = x.shape
    return pl.pallas_call(
        kern,
        out_shape=(jax.ShapeDtypeStruct((b, n, E), jnp.float32),
                   jax.ShapeDtypeStruct((b, E), jnp.float32)),
        in_specs=[_VMEM] * 16,
        out_specs=(_VMEM, _VMEM),
    )(x, mask_f32,
      packed['embed_w'], packed['embed_b'],
      packed['wq'], packed['wk'], packed['wv'], packed['wo'],
      packed['g1'], packed['be1'], packed['w1'], packed['b1'],
      packed['w2'], packed['b2'], packed['g2'], packed['be2'])


transformer_encoder = jax.jit(_transformer_encoder)


# ------------------------------ params ----------------------------------------
def _uniform(key, shape, last_dim):
    stdv = 1.0 / math.sqrt(last_dim)
    return jax.random.uniform(key, shape, jnp.float32, -stdv, stdv)


def make_params(key):
    """PyTorch-layout params (per-head attention weights), used by the reference."""
    keys = jax.random.split(key, 2 + N_LAYERS)
    params = {'embed_w': _uniform(keys[0], (NODE_DIM, E), E),
              'embed_b': _uniform(keys[1], (1, E), E),
              'layers': []}
    for li in range(N_LAYERS):
        ks = jax.random.split(keys[2 + li], 8)
        params['layers'].append({
            'wq': _uniform(ks[0], (H, E, DK), DK),
            'wk': _uniform(ks[1], (H, E, DK), DK),
            'wv': _uniform(ks[2], (H, E, DK), DK),
            'wo': _uniform(ks[3], (H, DK, E), E),
            'g1': jnp.ones((1, E), jnp.float32),     # BatchNorm affine defaults
            'be1': jnp.zeros((1, E), jnp.float32),
            'w1': _uniform(ks[4], (E, FF), FF),
            'b1': _uniform(ks[5], (1, FF), FF),
            'w2': _uniform(ks[6], (FF, E), E),
            'b2': _uniform(ks[7], (1, E), E),
            'g2': jnp.ones((1, E), jnp.float32),
            'be2': jnp.zeros((1, E), jnp.float32),
        })
    return params


def pack_params(params):
    """Re-layout per-head weights into lane-dense, layer-stacked slabs for the kernel."""
    layers = params['layers']

    def cat_heads(key):                       # (H,E,DK) -> (E, H*DK), stacked over L
        return jnp.stack([jnp.transpose(lp[key], (1, 0, 2)).reshape(E, H * DK)
                          for lp in layers])

    stack = lambda key: jnp.stack([lp[key] for lp in layers])
    return {
        'embed_w': params['embed_w'],
        'embed_b': params['embed_b'],
        'wq': cat_heads('wq'),                                     # (L, E, H*DK)
        'wk': cat_heads('wk'),
        'wv': cat_heads('wv'),
        'wo': jnp.stack([lp['wo'].reshape(H * DK, E) for lp in layers]),  # (L, H*DK, E)
        'g1': stack('g1'), 'be1': stack('be1'),                    # (L, 1, E)
        'w1': stack('w1'), 'b1': stack('b1'),                      # (L, E, FF), (L,1,FF)
        'w2': stack('w2'), 'b2': stack('b2'),                      # (L, FF, E), (L,1,E)
        'g2': stack('g2'), 'be2': stack('be2'),
    }


# ------------------------------ reference (plain JAX) -------------------------
def _reference(x, mask_bool, params):
    h = jnp.einsum('bnd,de->bne', x, params['embed_w']) + params['embed_b'][0]
    for p in params['layers']:
        mha = jnp.zeros_like(h)
        for hd in range(H):
            q = h @ p['wq'][hd]
            k = h @ p['wk'][hd]
            v = h @ p['wv'][hd]
            c = (1.0 / math.sqrt(DK)) * jnp.einsum('bqd,bkd->bqk', q, k)
            c = jnp.where(mask_bool, MASK_FILL, c)
            a = jax.nn.softmax(c, axis=-1)
            a = jnp.where(mask_bool, 0.0, a)
            mha = mha + jnp.einsum('bqk,bkd->bqd', a, v) @ p['wo'][hd]
        h1 = h + mha
        mu = jnp.mean(h1, axis=(0, 1)); var = jnp.mean((h1 - mu) ** 2, axis=(0, 1))
        h1 = (h1 - mu) / jnp.sqrt(var + BN_EPS) * p['g1'][0] + p['be1'][0]
        z = jnp.maximum(h1 @ p['w1'] + p['b1'][0], 0.0)
        h2 = h1 + (z @ p['w2'] + p['b2'][0])
        mu = jnp.mean(h2, axis=(0, 1)); var = jnp.mean((h2 - mu) ** 2, axis=(0, 1))
        h = (h2 - mu) / jnp.sqrt(var + BN_EPS) * p['g2'][0] + p['be2'][0]
    return h, h.mean(axis=1)


# ------------------------------ main ------------------------------------------
if __name__ == "__main__":
    key = jax.random.PRNGKey(0)
    kx, km, kp = jax.random.split(key, 3)

    x = jax.random.normal(kx, (B, N, NODE_DIM), jnp.float32)
    mask_bool = jax.random.bernoulli(km, 0.3, (B, N, N))   # True == masked out
    mask_f32 = mask_bool.astype(jnp.float32)

    params = make_params(kp)
    packed = pack_params(params)

    h, h_mean = transformer_encoder(x, mask_f32, packed)
    jax.block_until_ready((h, h_mean))

    h_ref, h_mean_ref = _reference(x, mask_bool, params)
    assert jnp.allclose(h, h_ref, rtol=1e-3, atol=1e-3), "h mismatch"
    assert jnp.allclose(h_mean, h_mean_ref, rtol=1e-3, atol=1e-3), "mean mismatch"

    print("KERNEL_OK")
</pallas_src>

<mosaic_0001>
module attributes {stable_mosaic.version = 11 : i64} {
  func.func @_encoder_kernel(%arg0: memref<2x8x6xf32, #tpu.memory_space<vmem>>, %arg1: memref<2x8x8xf32, #tpu.memory_space<vmem>>, %arg2: memref<6x32xf32, #tpu.memory_space<vmem>>, %arg3: memref<1x32xf32, #tpu.memory_space<vmem>>, %arg4: memref<2x32x32xf32, #tpu.memory_space<vmem>>, %arg5: memref<2x32x32xf32, #tpu.memory_space<vmem>>, %arg6: memref<2x32x32xf32, #tpu.memory_space<vmem>>, %arg7: memref<2x32x32xf32, #tpu.memory_space<vmem>>, %arg8: memref<2x1x32xf32, #tpu.memory_space<vmem>>, %arg9: memref<2x1x32xf32, #tpu.memory_space<vmem>>, %arg10: memref<2x32x64xf32, #tpu.memory_space<vmem>>, %arg11: memref<2x1x64xf32, #tpu.memory_space<vmem>>, %arg12: memref<2x64x32xf32, #tpu.memory_space<vmem>>, %arg13: memref<2x1x32xf32, #tpu.memory_space<vmem>>, %arg14: memref<2x1x32xf32, #tpu.memory_space<vmem>>, %arg15: memref<2x1x32xf32, #tpu.memory_space<vmem>>, %arg16: memref<2x8x32xf32, #tpu.memory_space<vmem>>, %arg17: memref<2x32xf32, #tpu.memory_space<vmem>>) attributes {dimension_semantics = [], scalar_prefetch = 0 : i64, scratch_operands = 0 : i64, tpu.core_type = #tpu.core_type<tc>} {
    %c0 = arith.constant 0 : index
    %c0_0 = arith.constant 0 : index
    %c0_1 = arith.constant 0 : index
    %0 = vector.load %arg0[%c0, %c0_0, %c0_1] : memref<2x8x6xf32, #tpu.memory_space<vmem>>, vector<2x8x6xf32>
    %c0_2 = arith.constant 0 : index
    %c0_3 = arith.constant 0 : index
    %1 = vector.load %arg2[%c0_2, %c0_3] : memref<6x32xf32, #tpu.memory_space<vmem>>, vector<6x32xf32>
    "tpu.trace_start"() <{level = 10 : i32, message = "bnd,de->bne"}> : () -> ()
    %cst = arith.constant dense<0.000000e+00> : vector<2x8x32xf32>
    %2 = tpu.matmul %0, %1, %cst {dimension_numbers = #tpu.dot_dimension_numbers<[2], [0], [0, 1], [1], [0, 0, 0, 1, 1, 1], [], []>} : vector<2x8x6xf32>, vector<6x32xf32>, vector<2x8x32xf32> -> vector<2x8x32xf32>
    "tpu.trace_stop"() : () -> ()
    %c0_4 = arith.constant 0 : index
    %c0_5 = arith.constant 0 : index
    %3 = vector.load %arg3[%c0_4, %c0_5] : memref<1x32xf32, #tpu.memory_space<vmem>>, vector<1x32xf32>
    %4 = vector.shape_cast %3 : vector<1x32xf32> to vector<32xf32>
    %5 = vector.shape_cast %4 : vector<32xf32> to vector<1x1x32xf32>
    %6 = vector.broadcast %5 : vector<1x1x32xf32> to vector<2x8x32xf32>
    %7 = arith.addf %2, %6 : vector<2x8x32xf32>
    %c0_6 = arith.constant 0 : index
    %c0_7 = arith.constant 0 : index
    %c0_8 = arith.constant 0 : index
    %8 = vector.load %arg1[%c0_6, %c0_7, %c0_8] : memref<2x8x8xf32, #tpu.memory_space<vmem>>, vector<2x8x8xf32>
    %cst_9 = arith.constant -9.99999979E+10 : f32
    %9 = vector.broadcast %cst_9 : f32 to vector<2x8x8xf32>
    %10 = arith.mulf %8, %9 : vector<2x8x8xf32>
    %cst_10 = arith.constant 1.000000e+00 : f32
    %11 = vector.broadcast %cst_10 : f32 to vector<2x8x8xf32>
    %12 = arith.subf %11, %8 : vector<2x8x8xf32>
    %13 = tpu.iota {dimensions = array<i32: 1>} : vector<1x32xi32>
    %c0_i32 = arith.constant 0 : i32
    %14 = vector.broadcast %c0_i32 : i32 to vector<1x32xi32>
    %15 = arith.cmpi sge, %13, %14 : vector<1x32xi32>
    %c8_i32 = arith.constant 8 : i32
    %16 = vector.broadcast %c8_i32 : i32 to vector<1x32xi32>
    %17 = arith.cmpi slt, %13, %16 : vector<1x32xi32>
    %18 = arith.andi %15, %17 : vector<1x32xi1>
    %cst_11 = arith.constant 1.000000e+00 : f32
    %cst_12 = arith.constant 0.000000e+00 : f32
    %19 = vector.broadcast %cst_11 : f32 to vector<1x32xf32>
    %20 = vector.broadcast %cst_12 : f32 to vector<1x32xf32>
    %21 = arith.select %18, %19, %20 : vector<1x32xi1>, vector<1x32xf32>
    %c8_i32_13 = arith.constant 8 : i32
    %22 = vector.broadcast %c8_i32_13 : i32 to vector<1x32xi32>
    %23 = arith.cmpi sge, %13, %22 : vector<1x32xi32>
    %c16_i32 = arith.constant 16 : i32
    %24 = vector.broadcast %c16_i32 : i32 to vector<1x32xi32>
    %25 = arith.cmpi slt, %13, %24 : vector<1x32xi32>
    %26 = arith.andi %23, %25 : vector<1x32xi1>
    %cst_14 = arith.constant 1.000000e+00 : f32
    %cst_15 = arith.constant 0.000000e+00 : f32
    %27 = vector.broadcast %cst_14 : f32 to vector<1x32xf32>
    %28 = vector.broadcast %cst_15 : f32 to vector<1x32xf32>
    %29 = arith.select %26, %27, %28 : vector<1x32xi1>, vector<1x32xf32>
    %c16_i32_16 = arith.constant 16 : i32
    %30 = vector.broadcast %c16_i32_16 : i32 to vector<1x32xi32>
    %31 = arith.cmpi sge, %13, %30 : vector<1x32xi32>
    %c24_i32 = arith.constant 24 : i32
    %32 = vector.broadcast %c24_i32 : i32 to vector<1x32xi32>
    %33 = arith.cmpi slt, %13, %32 : vector<1x32xi32>
    %34 = arith.andi %31, %33 : vector<1x32xi1>
    %cst_17 = arith.constant 1.000000e+00 : f32
    %cst_18 = arith.constant 0.000000e+00 : f32
    %35 = vector.broadcast %cst_17 : f32 to vector<1x32xf32>
    %36 = vector.broadcast %cst_18 : f32 to vector<1x32xf32>
    %37 = arith.select %34, %35, %36 : vector<1x32xi1>, vector<1x32xf32>
    %c24_i32_19 = arith.constant 24 : i32
    %38 = vector.broadcast %c24_i32_19 : i32 to vector<1x32xi32>
    %39 = arith.cmpi sge, %13, %38 : vector<1x32xi32>
    %c32_i32 = arith.constant 32 : i32
    %40 = vector.broadcast %c32_i32 : i32 to vector<1x32xi32>
    %41 = arith.cmpi slt, %13, %40 : vector<1x32xi32>
    %42 = arith.andi %39, %41 : vector<1x32xi1>
    %cst_20 = arith.constant 1.000000e+00 : f32
    %cst_21 = arith.constant 0.000000e+00 : f32
    %43 = vector.broadcast %cst_20 : f32 to vector<1x32xf32>
    %44 = vector.broadcast %cst_21 : f32 to vector<1x32xf32>
    %45 = arith.select %42, %43, %44 : vector<1x32xi1>, vector<1x32xf32>
    %c0_22 = arith.constant 0 : index
    %c0_23 = arith.constant 0 : index
    %c0_24 = arith.constant 0 : index
    %46 = vector.load %arg4[%c0_22, %c0_23, %c0_24] : memref<2x32x32xf32, #tpu.memory_space<vmem>>, vector<1x32x32xf32>
    %47 = vector.shape_cast %46 : vector<1x32x32xf32> to vector<32x32xf32>
    "tpu.trace_start"() <{level = 10 : i32, message = "bne,ed->bnd"}> : () -> ()
    %cst_25 = arith.constant dense<0.000000e+00> : vector<2x8x32xf32>
    %48 = tpu.matmul %7, %47, %cst_25 {dimension_numbers = #tpu.dot_dimension_numbers<[2], [0], [0, 1], [1], [0, 0, 0, 1, 1, 1], [], []>} : vector<2x8x32xf32>, vector<32x32xf32>, vector<2x8x32xf32> -> vector<2x8x32xf32>
    "tpu.trace_stop"() : () -> ()
    %c0_26 = arith.constant 0 : index
    %c0_27 = arith.constant 0 : index
    %c0_28 = arith.constant 0 : index
    %49 = vector.load %arg5[%c0_26, %c0_27, %c0_28] : memref<2x32x32xf32, #tpu.memory_space<vmem>>, vector<1x32x32xf32>
    %50 = vector.shape_cast %49 : vector<1x32x32xf32> to vector<32x32xf32>
    "tpu.trace_start"() <{level = 10 : i32, message = "bne,ed->bnd"}> : () -> ()
    %cst_29 = arith.constant dense<0.000000e+00> : vector<2x8x32xf32>
    %51 = tpu.matmul %7, %50, %cst_29 {dimension_numbers = #tpu.dot_dimension_numbers<[2], [0], [0, 1], [1], [0, 0, 0, 1, 1, 1], [], []>} : vector<2x8x32xf32>, vector<32x32xf32>, vector<2x8x32xf32> -> vector<2x8x32xf32>
    "tpu.trace_stop"() : () -> ()
    %c0_30 = arith.constant 0 : index
    %c0_31 = arith.constant 0 : index
    %c0_32 = arith.constant 0 : index
    %52 = vector.load %arg6[%c0_30, %c0_31, %c0_32] : memref<2x32x32xf32, #tpu.memory_space<vmem>>, vector<1x32x32xf32>
    %53 = vector.shape_cast %52 : vector<1x32x32xf32> to vector<32x32xf32>
    "tpu.trace_start"() <{level = 10 : i32, message = "bne,ed->bnd"}> : () -> ()
    %cst_33 = arith.constant dense<0.000000e+00> : vector<2x8x32xf32>
    %54 = tpu.matmul %7, %53, %cst_33 {dimension_numbers = #tpu.dot_dimension_numbers<[2], [0], [0, 1], [1], [0, 0, 0, 1, 1, 1], [], []>} : vector<2x8x32xf32>, vector<32x32xf32>, vector<2x8x32xf32> -> vector<2x8x32xf32>
    %cst_34 = arith.constant 0.000000e+00 : f32
    "tpu.trace_stop"() : () -> ()
    %55 = vector.broadcast %cst_34 : f32 to vector<2x8x32xf32>
    %56 = vector.shape_cast %21 : vector<1x32xf32> to vector<1x1x32xf32>
    %57 = vector.broadcast %56 : vector<1x1x32xf32> to vector<2x8x32xf32>
    %58 = arith.mulf %48, %57 : vector<2x8x32xf32>
    "tpu.trace_start"() <{level = 10 : i32, message = "bqd,bkd->bqk"}> : () -> ()
    %cst_35 = arith.constant dense<0.000000e+00> : vector<2x8x8xf32>
    %59 = tpu.matmul %58, %51, %cst_35 {dimension_numbers = #tpu.dot_dimension_numbers<[2], [2], [1], [1], [0, 0, 0, 1, 1, 1], [0], [0]>} : vector<2x8x32xf32>, vector<2x8x32xf32>, vector<2x8x8xf32> -> vector<2x8x8xf32>
    "tpu.trace_stop"() : () -> ()
    %cst_36 = arith.constant 0.353553385 : f32
    %60 = vector.broadcast %cst_36 : f32 to vector<2x8x8xf32>
    %61 = arith.mulf %60, %59 : vector<2x8x8xf32>
    %62 = arith.addf %61, %10 : vector<2x8x8xf32>
    %cst_37 = arith.constant dense<0xFF800000> : vector<2x8xf32>
    %63 = vector.multi_reduction <maximumf>, %62, %cst_37 [2] : vector<2x8x8xf32> to vector<2x8xf32>
    %64 = vector.shape_cast %63 : vector<2x8xf32> to vector<2x8x1xf32>
    %65 = vector.broadcast %64 : vector<2x8x1xf32> to vector<2x8x8xf32>
    %66 = arith.subf %62, %65 : vector<2x8x8xf32>
    %67 = math.exp %66 : vector<2x8x8xf32>
    %cst_38 = arith.constant dense<0.000000e+00> : vector<2x8xf32>
    %68 = vector.multi_reduction <add>, %67, %cst_38 [2] : vector<2x8x8xf32> to vector<2x8xf32>
    %69 = vector.shape_cast %68 : vector<2x8xf32> to vector<2x8x1xf32>
    %70 = arith.mulf %67, %12 : vector<2x8x8xf32>
    %71 = tpu.reciprocal %69 : vector<2x8x1xf32> -> vector<2x8x1xf32>
    %72 = vector.broadcast %71 : vector<2x8x1xf32> to vector<2x8x8xf32>
    %73 = arith.mulf %70, %72 : vector<2x8x8xf32>
    %74 = vector.shape_cast %21 : vector<1x32xf32> to vector<1x1x32xf32>
    %75 = vector.broadcast %74 : vector<1x1x32xf32> to vector<2x8x32xf32>
    %76 = arith.mulf %54, %75 : vector<2x8x32xf32>
    "tpu.trace_start"() <{level = 10 : i32, message = "bqk,bkd->bqd"}> : () -> ()
    %cst_39 = arith.constant dense<0.000000e+00> : vector<2x8x32xf32>
    %77 = tpu.matmul %73, %76, %cst_39 {dimension_numbers = #tpu.dot_dimension_numbers<[2], [1], [1], [2], [0, 0, 0, 1, 1, 2], [0], [0]>} : vector<2x8x8xf32>, vector<2x8x32xf32>, vector<2x8x32xf32> -> vector<2x8x32xf32>
    "tpu.trace_stop"() : () -> ()
    %78 = arith.addf %55, %77 : vector<2x8x32xf32>
    %79 = vector.shape_cast %29 : vector<1x32xf32> to vector<1x1x32xf32>
    %80 = vector.broadcast %79 : vector<1x1x32xf32> to vector<2x8x32xf32>
    %81 = arith.mulf %48, %80 : vector<2x8x32xf32>
    "tpu.trace_start"() <{level = 10 : i32, message = "bqd,bkd->bqk"}> : () -> ()
    %cst_40 = arith.constant dense<0.000000e+00> : vector<2x8x8xf32>
    %82 = tpu.matmul %81, %51, %cst_40 {dimension_numbers = #tpu.dot_dimension_numbers<[2], [2], [1], [1], [0, 0, 0, 1, 1, 1], [0], [0]>} : vector<2x8x32xf32>, vector<2x8x32xf32>, vector<2x8x8xf32> -> vector<2x8x8xf32>
    "tpu.trace_stop"() : () -> ()
    %cst_41 = arith.constant 0.353553385 : f32
    %83 = vector.broadcast %cst_41 : f32 to vector<2x8x8xf32>
    %84 = arith.mulf %83, %82 : vector<2x8x8xf32>
    %85 = arith.addf %84, %10 : vector<2x8x8xf32>
    %cst_42 = arith.constant dense<0xFF800000> : vector<2x8xf32>
    %86 = vector.multi_reduction <maximumf>, %85, %cst_42 [2] : vector<2x8x8xf32> to vector<2x8xf32>
    %87 = vector.shape_cast %86 : vector<2x8xf32> to vector<2x8x1xf32>
    %88 = vector.broadcast %87 : vector<2x8x1xf32> to vector<2x8x8xf32>
    %89 = arith.subf %85, %88 : vector<2x8x8xf32>
    %90 = math.exp %89 : vector<2x8x8xf32>
    %cst_43 = arith.constant dense<0.000000e+00> : vector<2x8xf32>
    %91 = vector.multi_reduction <add>, %90, %cst_43 [2] : vector<2x8x8xf32> to vector<2x8xf32>
    %92 = vector.shape_cast %91 : vector<2x8xf32> to vector<2x8x1xf32>
    %93 = arith.mulf %90, %12 : vector<2x8x8xf32>
    %94 = tpu.reciprocal %92 : vector<2x8x1xf32> -> vector<2x8x1xf32>
    %95 = vector.broadcast %94 : vector<2x8x1xf32> to vector<2x8x8xf32>
    %96 = arith.mulf %93, %95 : vector<2x8x8xf32>
    %97 = vector.shape_cast %29 : vector<1x32xf32> to vector<1x1x32xf32>
    %98 = vector.broadcast %97 : vector<1x1x32xf32> to vector<2x8x32xf32>
    %99 = arith.mulf %54, %98 : vector<2x8x32xf32>
    "tpu.trace_start"() <{level = 10 : i32, message = "bqk,bkd->bqd"}> : () -> ()
    %cst_44 = arith.constant dense<0.000000e+00> : vector<2x8x32xf32>
    %100 = tpu.matmul %96, %99, %cst_44 {dimension_numbers = #tpu.dot_dimension_numbers<[2], [1], [1], [2], [0, 0, 0, 1, 1, 2], [0], [0]>} : vector<2x8x8xf32>, vector<2x8x32xf32>, vector<2x8x32xf32> -> vector<2x8x32xf32>
    "tpu.trace_stop"() : () -> ()
    %101 = arith.addf %78, %100 : vector<2x8x32xf32>
    %102 = vector.shape_cast %37 : vector<1x32xf32> to vector<1x1x32xf32>
    %103 = vector.broadcast %102 : vector<1x1x32xf32> to vector<2x8x32xf32>
    %104 = arith.mulf %48, %103 : vector<2x8x32xf32>
    "tpu.trace_start"() <{level = 10 : i32, message = "bqd,bkd->bqk"}> : () -> ()
    %cst_45 = arith.constant dense<0.000000e+00> : vector<2x8x8xf32>
    %105 = tpu.matmul %104, %51, %cst_45 {dimension_numbers = #tpu.dot_dimension_numbers<[2], [2], [1], [1], [0, 0, 0, 1, 1, 1], [0], [0]>} : vector<2x8x32xf32>, vector<2x8x32xf32>, vector<2x8x8xf32> -> vector<2x8x8xf32>
    "tpu.trace_stop"() : () -> ()
    %cst_46 = arith.constant 0.353553385 : f32
    %106 = vector.broadcast %cst_46 : f32 to vector<2x8x8xf32>
    %107 = arith.mulf %106, %105 : vector<2x8x8xf32>
    %108 = arith.addf %107, %10 : vector<2x8x8xf32>
    %cst_47 = arith.constant dense<0xFF800000> : vector<2x8xf32>
    %109 = vector.multi_reduction <maximumf>, %108, %cst_47 [2] : vector<2x8x8xf32> to vector<2x8xf32>
    %110 = vector.shape_cast %109 : vector<2x8xf32> to vector<2x8x1xf32>
    %111 = vector.broadcast %110 : vector<2x8x1xf32> to vector<2x8x8xf32>
    %112 = arith.subf %108, %111 : vector<2x8x8xf32>
    %113 = math.exp %112 : vector<2x8x8xf32>
    %cst_48 = arith.constant dense<0.000000e+00> : vector<2x8xf32>
    %114 = vector.multi_reduction <add>, %113, %cst_48 [2] : vector<2x8x8xf32> to vector<2x8xf32>
    %115 = vector.shape_cast %114 : vector<2x8xf32> to vector<2x8x1xf32>
    %116 = arith.mulf %113, %12 : vector<2x8x8xf32>
    %117 = tpu.reciprocal %115 : vector<2x8x1xf32> -> vector<2x8x1xf32>
    %118 = vector.broadcast %117 : vector<2x8x1xf32> to vector<2x8x8xf32>
    %119 = arith.mulf %116, %118 : vector<2x8x8xf32>
    %120 = vector.shape_cast %37 : vector<1x32xf32> to vector<1x1x32xf32>
    %121 = vector.broadcast %120 : vector<1x1x32xf32> to vector<2x8x32xf32>
    %122 = arith.mulf %54, %121 : vector<2x8x32xf32>
    "tpu.trace_start"() <{level = 10 : i32, message = "bqk,bkd->bqd"}> : () -> ()
    %cst_49 = arith.constant dense<0.000000e+00> : vector<2x8x32xf32>
    %123 = tpu.matmul %119, %122, %cst_49 {dimension_numbers = #tpu.dot_dimension_numbers<[2], [1], [1], [2], [0, 0, 0, 1, 1, 2], [0], [0]>} : vector<2x8x8xf32>, vector<2x8x32xf32>, vector<2x8x32xf32> -> vector<2x8x32xf32>
    "tpu.trace_stop"() : () -> ()
    %124 = arith.addf %101, %123 : vector<2x8x32xf32>
    %125 = vector.shape_cast %45 : vector<1x32xf32> to vector<1x1x32xf32>
    %126 = vector.broadcast %125 : vector<1x1x32xf32> to vector<2x8x32xf32>
    %127 = arith.mulf %48, %126 : vector<2x8x32xf32>
    "tpu.trace_start"() <{level = 10 : i32, message = "bqd,bkd->bqk"}> : () -> ()
    %cst_50 = arith.constant dense<0.000000e+00> : vector<2x8x8xf32>
    %128 = tpu.matmul %127, %51, %cst_50 {dimension_numbers = #tpu.dot_dimension_numbers<[2], [2], [1], [1], [0, 0, 0, 1, 1, 1], [0], [0]>} : vector<2x8x32xf32>, vector<2x8x32xf32>, vector<2x8x8xf32> -> vector<2x8x8xf32>
    "tpu.trace_stop"() : () -> ()
    %cst_51 = arith.constant 0.353553385 : f32
    %129 = vector.broadcast %cst_51 : f32 to vector<2x8x8xf32>
    %130 = arith.mulf %129, %128 : vector<2x8x8xf32>
    %131 = arith.addf %130, %10 : vector<2x8x8xf32>
    %cst_52 = arith.constant dense<0xFF800000> : vector<2x8xf32>
    %132 = vector.multi_reduction <maximumf>, %131, %cst_52 [2] : vector<2x8x8xf32> to vector<2x8xf32>
    %133 = vector.shape_cast %132 : vector<2x8xf32> to vector<2x8x1xf32>
    %134 = vector.broadcast %133 : vector<2x8x1xf32> to vector<2x8x8xf32>
    %135 = arith.subf %131, %134 : vector<2x8x8xf32>
    %136 = math.exp %135 : vector<2x8x8xf32>
    %cst_53 = arith.constant dense<0.000000e+00> : vector<2x8xf32>
    %137 = vector.multi_reduction <add>, %136, %cst_53 [2] : vector<2x8x8xf32> to vector<2x8xf32>
    %138 = vector.shape_cast %137 : vector<2x8xf32> to vector<2x8x1xf32>
    %139 = arith.mulf %136, %12 : vector<2x8x8xf32>
    %140 = tpu.reciprocal %138 : vector<2x8x1xf32> -> vector<2x8x1xf32>
    %141 = vector.broadcast %140 : vector<2x8x1xf32> to vector<2x8x8xf32>
    %142 = arith.mulf %139, %141 : vector<2x8x8xf32>
    %143 = vector.shape_cast %45 : vector<1x32xf32> to vector<1x1x32xf32>
    %144 = vector.broadcast %143 : vector<1x1x32xf32> to vector<2x8x32xf32>
    %145 = arith.mulf %54, %144 : vector<2x8x32xf32>
    "tpu.trace_start"() <{level = 10 : i32, message = "bqk,bkd->bqd"}> : () -> ()
    %cst_54 = arith.constant dense<0.000000e+00> : vector<2x8x32xf32>
    %146 = tpu.matmul %142, %145, %cst_54 {dimension_numbers = #tpu.dot_dimension_numbers<[2], [1], [1], [2], [0, 0, 0, 1, 1, 2], [0], [0]>} : vector<2x8x8xf32>, vector<2x8x32xf32>, vector<2x8x32xf32> -> vector<2x8x32xf32>
    "tpu.trace_stop"() : () -> ()
    %147 = arith.addf %124, %146 : vector<2x8x32xf32>
    %c0_55 = arith.constant 0 : index
    %c0_56 = arith.constant 0 : index
    %c0_57 = arith.constant 0 : index
    %148 = vector.load %arg7[%c0_55, %c0_56, %c0_57] : memref<2x32x32xf32, #tpu.memory_space<vmem>>, vector<1x32x32xf32>
    %149 = vector.shape_cast %148 : vector<1x32x32xf32> to vector<32x32xf32>
    "tpu.trace_start"() <{level = 10 : i32, message = "bnd,de->bne"}> : () -> ()
    %cst_58 = arith.constant dense<0.000000e+00> : vector<2x8x32xf32>
    %150 = tpu.matmul %147, %149, %cst_58 {dimension_numbers = #tpu.dot_dimension_numbers<[2], [0], [0, 1], [1], [0, 0, 0, 1, 1, 1], [], []>} : vector<2x8x32xf32>, vector<32x32xf32>, vector<2x8x32xf32> -> vector<2x8x32xf32>
    "tpu.trace_stop"() : () -> ()
    %151 = arith.addf %7, %150 : vector<2x8x32xf32>
    %cst_59 = arith.constant dense<0.000000e+00> : vector<32xf32>
    %152 = vector.multi_reduction <add>, %151, %cst_59 [0, 1] : vector<2x8x32xf32> to vector<32xf32>
    %153 = vector.shape_cast %152 : vector<32xf32> to vector<1x1x32xf32>
    %cst_60 = arith.constant 1.600000e+01 : f32
    %154 = vector.broadcast %cst_60 : f32 to vector<1x1x32xf32>
    %155 = arith.divf %153, %154 : vector<1x1x32xf32>
    %156 = vector.broadcast %155 : vector<1x1x32xf32> to vector<2x8x32xf32>
    %157 = arith.subf %151, %156 : vector<2x8x32xf32>
    %158 = arith.mulf %157, %157 : vector<2x8x32xf32>
    %cst_61 = arith.constant dense<0.000000e+00> : vector<32xf32>
    %159 = vector.multi_reduction <add>, %158, %cst_61 [0, 1] : vector<2x8x32xf32> to vector<32xf32>
    %160 = vector.shape_cast %159 : vector<32xf32> to vector<1x1x32xf32>
    %cst_62 = arith.constant 1.600000e+01 : f32
    %161 = vector.broadcast %cst_62 : f32 to vector<1x1x32xf32>
    %162 = arith.divf %160, %161 : vector<1x1x32xf32>
    %163 = vector.broadcast %155 : vector<1x1x32xf32> to vector<2x8x32xf32>
    %164 = arith.subf %151, %163 : vector<2x8x32xf32>
    %cst_63 = arith.constant 9.99999974E-6 : f32
    %165 = vector.broadcast %cst_63 : f32 to vector<1x1x32xf32>
    %166 = arith.addf %162, %165 : vector<1x1x32xf32>
    %167 = math.rsqrt %166 : vector<1x1x32xf32>
    %168 = vector.broadcast %167 : vector<1x1x32xf32> to vector<2x8x32xf32>
    %169 = arith.mulf %164, %168 : vector<2x8x32xf32>
    %c0_64 = arith.constant 0 : index
    %c0_65 = arith.constant 0 : index
    %c0_66 = arith.constant 0 : index
    %170 = vector.load %arg8[%c0_64, %c0_65, %c0_66] : memref<2x1x32xf32, #tpu.memory_space<vmem>>, vector<1x1x32xf32>
    %171 = vector.shape_cast %170 : vector<1x1x32xf32> to vector<1x32xf32>
    %172 = vector.shape_cast %171 : vector<1x32xf32> to vector<1x1x32xf32>
    %173 = vector.broadcast %172 : vector<1x1x32xf32> to vector<2x8x32xf32>
    %174 = arith.mulf %169, %173 : vector<2x8x32xf32>
    %c0_67 = arith.constant 0 : index
    %c0_68 = arith.constant 0 : index
    %c0_69 = arith.constant 0 : index
    %175 = vector.load %arg9[%c0_67, %c0_68, %c0_69] : memref<2x1x32xf32, #tpu.memory_space<vmem>>, vector<1x1x32xf32>
    %176 = vector.shape_cast %175 : vector<1x1x32xf32> to vector<1x32xf32>
    %177 = vector.shape_cast %176 : vector<1x32xf32> to vector<1x1x32xf32>
    %178 = vector.broadcast %177 : vector<1x1x32xf32> to vector<2x8x32xf32>
    %179 = arith.addf %174, %178 : vector<2x8x32xf32>
    %c0_70 = arith.constant 0 : index
    %c0_71 = arith.constant 0 : index
    %c0_72 = arith.constant 0 : index
    %180 = vector.load %arg10[%c0_70, %c0_71, %c0_72] : memref<2x32x64xf32, #tpu.memory_space<vmem>>, vector<1x32x64xf32>
    %181 = vector.shape_cast %180 : vector<1x32x64xf32> to vector<32x64xf32>
    "tpu.trace_start"() <{level = 10 : i32, message = "bne,ef->bnf"}> : () -> ()
    %cst_73 = arith.constant dense<0.000000e+00> : vector<2x8x64xf32>
    %182 = tpu.matmul %179, %181, %cst_73 {dimension_numbers = #tpu.dot_dimension_numbers<[2], [0], [0, 1], [1], [0, 0, 0, 1, 1, 1], [], []>} : vector<2x8x32xf32>, vector<32x64xf32>, vector<2x8x64xf32> -> vector<2x8x64xf32>
    "tpu.trace_stop"() : () -> ()
    %c0_74 = arith.constant 0 : index
    %c0_75 = arith.constant 0 : index
    %c0_76 = arith.constant 0 : index
    %183 = vector.load %arg11[%c0_74, %c0_75, %c0_76] : memref<2x1x64xf32, #tpu.memory_space<vmem>>, vector<1x1x64xf32>
    %184 = vector.shape_cast %183 : vector<1x1x64xf32> to vector<1x64xf32>
    %185 = vector.shape_cast %184 : vector<1x64xf32> to vector<1x1x64xf32>
    %186 = vector.broadcast %185 : vector<1x1x64xf32> to vector<2x8x64xf32>
    %187 = arith.addf %182, %186 : vector<2x8x64xf32>
    %cst_77 = arith.constant 0.000000e+00 : f32
    %188 = vector.broadcast %cst_77 : f32 to vector<2x8x64xf32>
    %189 = arith.maximumf %187, %188 : vector<2x8x64xf32>
    %c0_78 = arith.constant 0 : index
    %c0_79 = arith.constant 0 : index
    %c0_80 = arith.constant 0 : index
    %190 = vector.load %arg12[%c0_78, %c0_79, %c0_80] : memref<2x64x32xf32, #tpu.memory_space<vmem>>, vector<1x64x32xf32>
    %191 = vector.shape_cast %190 : vector<1x64x32xf32> to vector<64x32xf32>
    "tpu.trace_start"() <{level = 10 : i32, message = "bnf,fe->bne"}> : () -> ()
    %cst_81 = arith.constant dense<0.000000e+00> : vector<2x8x32xf32>
    %192 = tpu.matmul %189, %191, %cst_81 {dimension_numbers = #tpu.dot_dimension_numbers<[2], [0], [0, 1], [1], [0, 0, 0, 1, 1, 1], [], []>} : vector<2x8x64xf32>, vector<64x32xf32>, vector<2x8x32xf32> -> vector<2x8x32xf32>
    "tpu.trace_stop"() : () -> ()
    %c0_82 = arith.constant 0 : index
    %c0_83 = arith.constant 0 : index
    %c0_84 = arith.constant 0 : index
    %193 = vector.load %arg13[%c0_82, %c0_83, %c0_84] : memref<2x1x32xf32, #tpu.memory_space<vmem>>, vector<1x1x32xf32>
    %194 = vector.shape_cast %193 : vector<1x1x32xf32> to vector<1x32xf32>
    %195 = vector.shape_cast %194 : vector<1x32xf32> to vector<1x1x32xf32>
    %196 = vector.broadcast %195 : vector<1x1x32xf32> to vector<2x8x32xf32>
    %197 = arith.addf %192, %196 : vector<2x8x32xf32>
    %198 = arith.addf %179, %197 : vector<2x8x32xf32>
    %cst_85 = arith.constant dense<0.000000e+00> : vector<32xf32>
    %199 = vector.multi_reduction <add>, %198, %cst_85 [0, 1] : vector<2x8x32xf32> to vector<32xf32>
    %200 = vector.shape_cast %199 : vector<32xf32> to vector<1x1x32xf32>
    %cst_86 = arith.constant 1.600000e+01 : f32
    %201 = vector.broadcast %cst_86 : f32 to vector<1x1x32xf32>
    %202 = arith.divf %200, %201 : vector<1x1x32xf32>
    %203 = vector.broadcast %202 : vector<1x1x32xf32> to vector<2x8x32xf32>
    %204 = arith.subf %198, %203 : vector<2x8x32xf32>
    %205 = arith.mulf %204, %204 : vector<2x8x32xf32>
    %cst_87 = arith.constant dense<0.000000e+00> : vector<32xf32>
    %206 = vector.multi_reduction <add>, %205, %cst_87 [0, 1] : vector<2x8x32xf32> to vector<32xf32>
    %207 = vector.shape_cast %206 : vector<32xf32> to vector<1x1x32xf32>
    %cst_88 = arith.constant 1.600000e+01 : f32
    %208 = vector.broadcast %cst_88 : f32 to vector<1x1x32xf32>
    %209 = arith.divf %207, %208 : vector<1x1x32xf32>
    %210 = vector.broadcast %202 : vector<1x1x32xf32> to vector<2x8x32xf32>
    %211 = arith.subf %198, %210 : vector<2x8x32xf32>
    %cst_89 = arith.constant 9.99999974E-6 : f32
    %212 = vector.broadcast %cst_89 : f32 to vector<1x1x32xf32>
    %213 = arith.addf %209, %212 : vector<1x1x32xf32>
    %214 = math.rsqrt %213 : vector<1x1x32xf32>
    %215 = vector.broadcast %214 : vector<1x1x32xf32> to vector<2x8x32xf32>
    %216 = arith.mulf %211, %215 : vector<2x8x32xf32>
    %c0_90 = arith.constant 0 : index
    %c0_91 = arith.constant 0 : index
    %c0_92 = arith.constant 0 : index
    %217 = vector.load %arg14[%c0_90, %c0_91, %c0_92] : memref<2x1x32xf32, #tpu.memory_space<vmem>>, vector<1x1x32xf32>
    %218 = vector.shape_cast %217 : vector<1x1x32xf32> to vector<1x32xf32>
    %219 = vector.shape_cast %218 : vector<1x32xf32> to vector<1x1x32xf32>
    %220 = vector.broadcast %219 : vector<1x1x32xf32> to vector<2x8x32xf32>
    %221 = arith.mulf %216, %220 : vector<2x8x32xf32>
    %c0_93 = arith.constant 0 : index
    %c0_94 = arith.constant 0 : index
    %c0_95 = arith.constant 0 : index
    %222 = vector.load %arg15[%c0_93, %c0_94, %c0_95] : memref<2x1x32xf32, #tpu.memory_space<vmem>>, vector<1x1x32xf32>
    %223 = vector.shape_cast %222 : vector<1x1x32xf32> to vector<1x32xf32>
    %224 = vector.shape_cast %223 : vector<1x32xf32> to vector<1x1x32xf32>
    %225 = vector.broadcast %224 : vector<1x1x32xf32> to vector<2x8x32xf32>
    %226 = arith.addf %221, %225 : vector<2x8x32xf32>
    %c1 = arith.constant 1 : index
    %c0_96 = arith.constant 0 : index
    %c0_97 = arith.constant 0 : index
    %227 = vector.load %arg4[%c1, %c0_96, %c0_97] : memref<2x32x32xf32, #tpu.memory_space<vmem>>, vector<1x32x32xf32>
    %228 = vector.shape_cast %227 : vector<1x32x32xf32> to vector<32x32xf32>
    "tpu.trace_start"() <{level = 10 : i32, message = "bne,ed->bnd"}> : () -> ()
    %cst_98 = arith.constant dense<0.000000e+00> : vector<2x8x32xf32>
    %229 = tpu.matmul %226, %228, %cst_98 {dimension_numbers = #tpu.dot_dimension_numbers<[2], [0], [0, 1], [1], [0, 0, 0, 1, 1, 1], [], []>} : vector<2x8x32xf32>, vector<32x32xf32>, vector<2x8x32xf32> -> vector<2x8x32xf32>
    "tpu.trace_stop"() : () -> ()
    %c1_99 = arith.constant 1 : index
    %c0_100 = arith.constant 0 : index
    %c0_101 = arith.constant 0 : index
    %230 = vector.load %arg5[%c1_99, %c0_100, %c0_101] : memref<2x32x32xf32, #tpu.memory_space<vmem>>, vector<1x32x32xf32>
    %231 = vector.shape_cast %230 : vector<1x32x32xf32> to vector<32x32xf32>
    "tpu.trace_start"() <{level = 10 : i32, message = "bne,ed->bnd"}> : () -> ()
    %cst_102 = arith.constant dense<0.000000e+00> : vector<2x8x32xf32>
    %232 = tpu.matmul %226, %231, %cst_102 {dimension_numbers = #tpu.dot_dimension_numbers<[2], [0], [0, 1], [1], [0, 0, 0, 1, 1, 1], [], []>} : vector<2x8x32xf32>, vector<32x32xf32>, vector<2x8x32xf32> -> vector<2x8x32xf32>
    "tpu.trace_stop"() : () -> ()
    %c1_103 = arith.constant 1 : index
    %c0_104 = arith.constant 0 : index
    %c0_105 = arith.constant 0 : index
    %233 = vector.load %arg6[%c1_103, %c0_104, %c0_105] : memref<2x32x32xf32, #tpu.memory_space<vmem>>, vector<1x32x32xf32>
    %234 = vector.shape_cast %233 : vector<1x32x32xf32> to vector<32x32xf32>
    "tpu.trace_start"() <{level = 10 : i32, message = "bne,ed->bnd"}> : () -> ()
    %cst_106 = arith.constant dense<0.000000e+00> : vector<2x8x32xf32>
    %235 = tpu.matmul %226, %234, %cst_106 {dimension_numbers = #tpu.dot_dimension_numbers<[2], [0], [0, 1], [1], [0, 0, 0, 1, 1, 1], [], []>} : vector<2x8x32xf32>, vector<32x32xf32>, vector<2x8x32xf32> -> vector<2x8x32xf32>
    %cst_107 = arith.constant 0.000000e+00 : f32
    "tpu.trace_stop"() : () -> ()
    %236 = vector.broadcast %cst_107 : f32 to vector<2x8x32xf32>
    %237 = vector.shape_cast %21 : vector<1x32xf32> to vector<1x1x32xf32>
    %238 = vector.broadcast %237 : vector<1x1x32xf32> to vector<2x8x32xf32>
    %239 = arith.mulf %229, %238 : vector<2x8x32xf32>
    "tpu.trace_start"() <{level = 10 : i32, message = "bqd,bkd->bqk"}> : () -> ()
    %cst_108 = arith.constant dense<0.000000e+00> : vector<2x8x8xf32>
    %240 = tpu.matmul %239, %232, %cst_108 {dimension_numbers = #tpu.dot_dimension_numbers<[2], [2], [1], [1], [0, 0, 0, 1, 1, 1], [0], [0]>} : vector<2x8x32xf32>, vector<2x8x32xf32>, vector<2x8x8xf32> -> vector<2x8x8xf32>
    "tpu.trace_stop"() : () -> ()
    %cst_109 = arith.constant 0.353553385 : f32
    %241 = vector.broadcast %cst_109 : f32 to vector<2x8x8xf32>
    %242 = arith.mulf %241, %240 : vector<2x8x8xf32>
    %243 = arith.addf %242, %10 : vector<2x8x8xf32>
    %cst_110 = arith.constant dense<0xFF800000> : vector<2x8xf32>
    %244 = vector.multi_reduction <maximumf>, %243, %cst_110 [2] : vector<2x8x8xf32> to vector<2x8xf32>
    %245 = vector.shape_cast %244 : vector<2x8xf32> to vector<2x8x1xf32>
    %246 = vector.broadcast %245 : vector<2x8x1xf32> to vector<2x8x8xf32>
    %247 = arith.subf %243, %246 : vector<2x8x8xf32>
    %248 = math.exp %247 : vector<2x8x8xf32>
    %cst_111 = arith.constant dense<0.000000e+00> : vector<2x8xf32>
    %249 = vector.multi_reduction <add>, %248, %cst_111 [2] : vector<2x8x8xf32> to vector<2x8xf32>
    %250 = vector.shape_cast %249 : vector<2x8xf32> to vector<2x8x1xf32>
    %251 = arith.mulf %248, %12 : vector<2x8x8xf32>
    %252 = tpu.reciprocal %250 : vector<2x8x1xf32> -> vector<2x8x1xf32>
    %253 = vector.broadcast %252 : vector<2x8x1xf32> to vector<2x8x8xf32>
    %254 = arith.mulf %251, %253 : vector<2x8x8xf32>
    %255 = vector.shape_cast %21 : vector<1x32xf32> to vector<1x1x32xf32>
    %256 = vector.broadcast %255 : vector<1x1x32xf32> to vector<2x8x32xf32>
    %257 = arith.mulf %235, %256 : vector<2x8x32xf32>
    "tpu.trace_start"() <{level = 10 : i32, message = "bqk,bkd->bqd"}> : () -> ()
    %cst_112 = arith.constant dense<0.000000e+00> : vector<2x8x32xf32>
    %258 = tpu.matmul %254, %257, %cst_112 {dimension_numbers = #tpu.dot_dimension_numbers<[2], [1], [1], [2], [0, 0, 0, 1, 1, 2], [0], [0]>} : vector<2x8x8xf32>, vector<2x8x32xf32>, vector<2x8x32xf32> -> vector<2x8x32xf32>
    "tpu.trace_stop"() : () -> ()
    %259 = arith.addf %236, %258 : vector<2x8x32xf32>
    %260 = vector.shape_cast %29 : vector<1x32xf32> to vector<1x1x32xf32>
    %261 = vector.broadcast %260 : vector<1x1x32xf32> to vector<2x8x32xf32>
    %262 = arith.mulf %229, %261 : vector<2x8x32xf32>
    "tpu.trace_start"() <{level = 10 : i32, message = "bqd,bkd->bqk"}> : () -> ()
    %cst_113 = arith.constant dense<0.000000e+00> : vector<2x8x8xf32>
    %263 = tpu.matmul %262, %232, %cst_113 {dimension_numbers = #tpu.dot_dimension_numbers<[2], [2], [1], [1], [0, 0, 0, 1, 1, 1], [0], [0]>} : vector<2x8x32xf32>, vector<2x8x32xf32>, vector<2x8x8xf32> -> vector<2x8x8xf32>
    "tpu.trace_stop"() : () -> ()
    %cst_114 = arith.constant 0.353553385 : f32
    %264 = vector.broadcast %cst_114 : f32 to vector<2x8x8xf32>
    %265 = arith.mulf %264, %263 : vector<2x8x8xf32>
    %266 = arith.addf %265, %10 : vector<2x8x8xf32>
    %cst_115 = arith.constant dense<0xFF800000> : vector<2x8xf32>
    %267 = vector.multi_reduction <maximumf>, %266, %cst_115 [2] : vector<2x8x8xf32> to vector<2x8xf32>
    %268 = vector.shape_cast %267 : vector<2x8xf32> to vector<2x8x1xf32>
    %269 = vector.broadcast %268 : vector<2x8x1xf32> to vector<2x8x8xf32>
    %270 = arith.subf %266, %269 : vector<2x8x8xf32>
    %271 = math.exp %270 : vector<2x8x8xf32>
    %cst_116 = arith.constant dense<0.000000e+00> : vector<2x8xf32>
    %272 = vector.multi_reduction <add>, %271, %cst_116 [2] : vector<2x8x8xf32> to vector<2x8xf32>
    %273 = vector.shape_cast %272 : vector<2x8xf32> to vector<2x8x1xf32>
    %274 = arith.mulf %271, %12 : vector<2x8x8xf32>
    %275 = tpu.reciprocal %273 : vector<2x8x1xf32> -> vector<2x8x1xf32>
    %276 = vector.broadcast %275 : vector<2x8x1xf32> to vector<2x8x8xf32>
    %277 = arith.mulf %274, %276 : vector<2x8x8xf32>
    %278 = vector.shape_cast %29 : vector<1x32xf32> to vector<1x1x32xf32>
    %279 = vector.broadcast %278 : vector<1x1x32xf32> to vector<2x8x32xf32>
    %280 = arith.mulf %235, %279 : vector<2x8x32xf32>
    "tpu.trace_start"() <{level = 10 : i32, message = "bqk,bkd->bqd"}> : () -> ()
    %cst_117 = arith.constant dense<0.000000e+00> : vector<2x8x32xf32>
    %281 = tpu.matmul %277, %280, %cst_117 {dimension_numbers = #tpu.dot_dimension_numbers<[2], [1], [1], [2], [0, 0, 0, 1, 1, 2], [0], [0]>} : vector<2x8x8xf32>, vector<2x8x32xf32>, vector<2x8x32xf32> -> vector<2x8x32xf32>
    "tpu.trace_stop"() : () -> ()
    %282 = arith.addf %259, %281 : vector<2x8x32xf32>
    %283 = vector.shape_cast %37 : vector<1x32xf32> to vector<1x1x32xf32>
    %284 = vector.broadcast %283 : vector<1x1x32xf32> to vector<2x8x32xf32>
    %285 = arith.mulf %229, %284 : vector<2x8x32xf32>
    "tpu.trace_start"() <{level = 10 : i32, message = "bqd,bkd->bqk"}> : () -> ()
    %cst_118 = arith.constant dense<0.000000e+00> : vector<2x8x8xf32>
    %286 = tpu.matmul %285, %232, %cst_118 {dimension_numbers = #tpu.dot_dimension_numbers<[2], [2], [1], [1], [0, 0, 0, 1, 1, 1], [0], [0]>} : vector<2x8x32xf32>, vector<2x8x32xf32>, vector<2x8x8xf32> -> vector<2x8x8xf32>
    "tpu.trace_stop"() : () -> ()
    %cst_119 = arith.constant 0.353553385 : f32
    %287 = vector.broadcast %cst_119 : f32 to vector<2x8x8xf32>
    %288 = arith.mulf %287, %286 : vector<2x8x8xf32>
    %289 = arith.addf %288, %10 : vector<2x8x8xf32>
    %cst_120 = arith.constant dense<0xFF800000> : vector<2x8xf32>
    %290 = vector.multi_reduction <maximumf>, %289, %cst_120 [2] : vector<2x8x8xf32> to vector<2x8xf32>
    %291 = vector.shape_cast %290 : vector<2x8xf32> to vector<2x8x1xf32>
    %292 = vector.broadcast %291 : vector<2x8x1xf32> to vector<2x8x8xf32>
    %293 = arith.subf %289, %292 : vector<2x8x8xf32>
    %294 = math.exp %293 : vector<2x8x8xf32>
    %cst_121 = arith.constant dense<0.000000e+00> : vector<2x8xf32>
    %295 = vector.multi_reduction <add>, %294, %cst_121 [2] : vector<2x8x8xf32> to vector<2x8xf32>
    %296 = vector.shape_cast %295 : vector<2x8xf32> to vector<2x8x1xf32>
    %297 = arith.mulf %294, %12 : vector<2x8x8xf32>
    %298 = tpu.reciprocal %296 : vector<2x8x1xf32> -> vector<2x8x1xf32>
    %299 = vector.broadcast %298 : vector<2x8x1xf32> to vector<2x8x8xf32>
    %300 = arith.mulf %297, %299 : vector<2x8x8xf32>
    %301 = vector.shape_cast %37 : vector<1x32xf32> to vector<1x1x32xf32>
    %302 = vector.broadcast %301 : vector<1x1x32xf32> to vector<2x8x32xf32>
    %303 = arith.mulf %235, %302 : vector<2x8x32xf32>
    "tpu.trace_start"() <{level = 10 : i32, message = "bqk,bkd->bqd"}> : () -> ()
    %cst_122 = arith.constant dense<0.000000e+00> : vector<2x8x32xf32>
    %304 = tpu.matmul %300, %303, %cst_122 {dimension_numbers = #tpu.dot_dimension_numbers<[2], [1], [1], [2], [0, 0, 0, 1, 1, 2], [0], [0]>} : vector<2x8x8xf32>, vector<2x8x32xf32>, vector<2x8x32xf32> -> vector<2x8x32xf32>
    "tpu.trace_stop"() : () -> ()
    %305 = arith.addf %282, %304 : vector<2x8x32xf32>
    %306 = vector.shape_cast %45 : vector<1x32xf32> to vector<1x1x32xf32>
    %307 = vector.broadcast %306 : vector<1x1x32xf32> to vector<2x8x32xf32>
    %308 = arith.mulf %229, %307 : vector<2x8x32xf32>
    "tpu.trace_start"() <{level = 10 : i32, message = "bqd,bkd->bqk"}> : () -> ()
    %cst_123 = arith.constant dense<0.000000e+00> : vector<2x8x8xf32>
    %309 = tpu.matmul %308, %232, %cst_123 {dimension_numbers = #tpu.dot_dimension_numbers<[2], [2], [1], [1], [0, 0, 0, 1, 1, 1], [0], [0]>} : vector<2x8x32xf32>, vector<2x8x32xf32>, vector<2x8x8xf32> -> vector<2x8x8xf32>
    "tpu.trace_stop"() : () -> ()
    %cst_124 = arith.constant 0.353553385 : f32
    %310 = vector.broadcast %cst_124 : f32 to vector<2x8x8xf32>
    %311 = arith.mulf %310, %309 : vector<2x8x8xf32>
    %312 = arith.addf %311, %10 : vector<2x8x8xf32>
    %cst_125 = arith.constant dense<0xFF800000> : vector<2x8xf32>
    %313 = vector.multi_reduction <maximumf>, %312, %cst_125 [2] : vector<2x8x8xf32> to vector<2x8xf32>
    %314 = vector.shape_cast %313 : vector<2x8xf32> to vector<2x8x1xf32>
    %315 = vector.broadcast %314 : vector<2x8x1xf32> to vector<2x8x8xf32>
    %316 = arith.subf %312, %315 : vector<2x8x8xf32>
    %317 = math.exp %316 : vector<2x8x8xf32>
    %cst_126 = arith.constant dense<0.000000e+00> : vector<2x8xf32>
    %318 = vector.multi_reduction <add>, %317, %cst_126 [2] : vector<2x8x8xf32> to vector<2x8xf32>
    %319 = vector.shape_cast %318 : vector<2x8xf32> to vector<2x8x1xf32>
    %320 = arith.mulf %317, %12 : vector<2x8x8xf32>
    %321 = tpu.reciprocal %319 : vector<2x8x1xf32> -> vector<2x8x1xf32>
    %322 = vector.broadcast %321 : vector<2x8x1xf32> to vector<2x8x8xf32>
    %323 = arith.mulf %320, %322 : vector<2x8x8xf32>
    %324 = vector.shape_cast %45 : vector<1x32xf32> to vector<1x1x32xf32>
    %325 = vector.broadcast %324 : vector<1x1x32xf32> to vector<2x8x32xf32>
    %326 = arith.mulf %235, %325 : vector<2x8x32xf32>
    "tpu.trace_start"() <{level = 10 : i32, message = "bqk,bkd->bqd"}> : () -> ()
    %cst_127 = arith.constant dense<0.000000e+00> : vector<2x8x32xf32>
    %327 = tpu.matmul %323, %326, %cst_127 {dimension_numbers = #tpu.dot_dimension_numbers<[2], [1], [1], [2], [0, 0, 0, 1, 1, 2], [0], [0]>} : vector<2x8x8xf32>, vector<2x8x32xf32>, vector<2x8x32xf32> -> vector<2x8x32xf32>
    "tpu.trace_stop"() : () -> ()
    %328 = arith.addf %305, %327 : vector<2x8x32xf32>
    %c1_128 = arith.constant 1 : index
    %c0_129 = arith.constant 0 : index
    %c0_130 = arith.constant 0 : index
    %329 = vector.load %arg7[%c1_128, %c0_129, %c0_130] : memref<2x32x32xf32, #tpu.memory_space<vmem>>, vector<1x32x32xf32>
    %330 = vector.shape_cast %329 : vector<1x32x32xf32> to vector<32x32xf32>
    "tpu.trace_start"() <{level = 10 : i32, message = "bnd,de->bne"}> : () -> ()
    %cst_131 = arith.constant dense<0.000000e+00> : vector<2x8x32xf32>
    %331 = tpu.matmul %328, %330, %cst_131 {dimension_numbers = #tpu.dot_dimension_numbers<[2], [0], [0, 1], [1], [0, 0, 0, 1, 1, 1], [], []>} : vector<2x8x32xf32>, vector<32x32xf32>, vector<2x8x32xf32> -> vector<2x8x32xf32>
    "tpu.trace_stop"() : () -> ()
    %332 = arith.addf %226, %331 : vector<2x8x32xf32>
    %cst_132 = arith.constant dense<0.000000e+00> : vector<32xf32>
    %333 = vector.multi_reduction <add>, %332, %cst_132 [0, 1] : vector<2x8x32xf32> to vector<32xf32>
    %334 = vector.shape_cast %333 : vector<32xf32> to vector<1x1x32xf32>
    %cst_133 = arith.constant 1.600000e+01 : f32
    %335 = vector.broadcast %cst_133 : f32 to vector<1x1x32xf32>
    %336 = arith.divf %334, %335 : vector<1x1x32xf32>
    %337 = vector.broadcast %336 : vector<1x1x32xf32> to vector<2x8x32xf32>
    %338 = arith.subf %332, %337 : vector<2x8x32xf32>
    %339 = arith.mulf %338, %338 : vector<2x8x32xf32>
    %cst_134 = arith.constant dense<0.000000e+00> : vector<32xf32>
    %340 = vector.multi_reduction <add>, %339, %cst_134 [0, 1] : vector<2x8x32xf32> to vector<32xf32>
    %341 = vector.shape_cast %340 : vector<32xf32> to vector<1x1x32xf32>
    %cst_135 = arith.constant 1.600000e+01 : f32
    %342 = vector.broadcast %cst_135 : f32 to vector<1x1x32xf32>
    %343 = arith.divf %341, %342 : vector<1x1x32xf32>
    %344 = vector.broadcast %336 : vector<1x1x32xf32> to vector<2x8x32xf32>
    %345 = arith.subf %332, %344 : vector<2x8x32xf32>
    %cst_136 = arith.constant 9.99999974E-6 : f32
    %346 = vector.broadcast %cst_136 : f32 to vector<1x1x32xf32>
    %347 = arith.addf %343, %346 : vector<1x1x32xf32>
    %348 = math.rsqrt %347 : vector<1x1x32xf32>
    %349 = vector.broadcast %348 : vector<1x1x32xf32> to vector<2x8x32xf32>
    %350 = arith.mulf %345, %349 : vector<2x8x32xf32>
    %c1_137 = arith.constant 1 : index
    %c0_138 = arith.constant 0 : index
    %c0_139 = arith.constant 0 : index
    %351 = vector.load %arg8[%c1_137, %c0_138, %c0_139] : memref<2x1x32xf32, #tpu.memory_space<vmem>>, vector<1x1x32xf32>
    %352 = vector.shape_cast %351 : vector<1x1x32xf32> to vector<1x32xf32>
    %353 = vector.shape_cast %352 : vector<1x32xf32> to vector<1x1x32xf32>
    %354 = vector.broadcast %353 : vector<1x1x32xf32> to vector<2x8x32xf32>
    %355 = arith.mulf %350, %354 : vector<2x8x32xf32>
    %c1_140 = arith.constant 1 : index
    %c0_141 = arith.constant 0 : index
    %c0_142 = arith.constant 0 : index
    %356 = vector.load %arg9[%c1_140, %c0_141, %c0_142] : memref<2x1x32xf32, #tpu.memory_space<vmem>>, vector<1x1x32xf32>
    %357 = vector.shape_cast %356 : vector<1x1x32xf32> to vector<1x32xf32>
    %358 = vector.shape_cast %357 : vector<1x32xf32> to vector<1x1x32xf32>
    %359 = vector.broadcast %358 : vector<1x1x32xf32> to vector<2x8x32xf32>
    %360 = arith.addf %355, %359 : vector<2x8x32xf32>
    %c1_143 = arith.constant 1 : index
    %c0_144 = arith.constant 0 : index
    %c0_145 = arith.constant 0 : index
    %361 = vector.load %arg10[%c1_143, %c0_144, %c0_145] : memref<2x32x64xf32, #tpu.memory_space<vmem>>, vector<1x32x64xf32>
    %362 = vector.shape_cast %361 : vector<1x32x64xf32> to vector<32x64xf32>
    "tpu.trace_start"() <{level = 10 : i32, message = "bne,ef->bnf"}> : () -> ()
    %cst_146 = arith.constant dense<0.000000e+00> : vector<2x8x64xf32>
    %363 = tpu.matmul %360, %362, %cst_146 {dimension_numbers = #tpu.dot_dimension_numbers<[2], [0], [0, 1], [1], [0, 0, 0, 1, 1, 1], [], []>} : vector<2x8x32xf32>, vector<32x64xf32>, vector<2x8x64xf32> -> vector<2x8x64xf32>
    "tpu.trace_stop"() : () -> ()
    %c1_147 = arith.constant 1 : index
    %c0_148 = arith.constant 0 : index
    %c0_149 = arith.constant 0 : index
    %364 = vector.load %arg11[%c1_147, %c0_148, %c0_149] : memref<2x1x64xf32, #tpu.memory_space<vmem>>, vector<1x1x64xf32>
    %365 = vector.shape_cast %364 : vector<1x1x64xf32> to vector<1x64xf32>
    %366 = vector.shape_cast %365 : vector<1x64xf32> to vector<1x1x64xf32>
    %367 = vector.broadcast %366 : vector<1x1x64xf32> to vector<2x8x64xf32>
    %368 = arith.addf %363, %367 : vector<2x8x64xf32>
    %cst_150 = arith.constant 0.000000e+00 : f32
    %369 = vector.broadcast %cst_150 : f32 to vector<2x8x64xf32>
    %370 = arith.maximumf %368, %369 : vector<2x8x64xf32>
    %c1_151 = arith.constant 1 : index
    %c0_152 = arith.constant 0 : index
    %c0_153 = arith.constant 0 : index
    %371 = vector.load %arg12[%c1_151, %c0_152, %c0_153] : memref<2x64x32xf32, #tpu.memory_space<vmem>>, vector<1x64x32xf32>
    %372 = vector.shape_cast %371 : vector<1x64x32xf32> to vector<64x32xf32>
    "tpu.trace_start"() <{level = 10 : i32, message = "bnf,fe->bne"}> : () -> ()
    %cst_154 = arith.constant dense<0.000000e+00> : vector<2x8x32xf32>
    %373 = tpu.matmul %370, %372, %cst_154 {dimension_numbers = #tpu.dot_dimension_numbers<[2], [0], [0, 1], [1], [0, 0, 0, 1, 1, 1], [], []>} : vector<2x8x64xf32>, vector<64x32xf32>, vector<2x8x32xf32> -> vector<2x8x32xf32>
    "tpu.trace_stop"() : () -> ()
    %c1_155 = arith.constant 1 : index
    %c0_156 = arith.constant 0 : index
    %c0_157 = arith.constant 0 : index
    %374 = vector.load %arg13[%c1_155, %c0_156, %c0_157] : memref<2x1x32xf32, #tpu.memory_space<vmem>>, vector<1x1x32xf32>
    %375 = vector.shape_cast %374 : vector<1x1x32xf32> to vector<1x32xf32>
    %376 = vector.shape_cast %375 : vector<1x32xf32> to vector<1x1x32xf32>
    %377 = vector.broadcast %376 : vector<1x1x32xf32> to vector<2x8x32xf32>
    %378 = arith.addf %373, %377 : vector<2x8x32xf32>
    %379 = arith.addf %360, %378 : vector<2x8x32xf32>
    %cst_158 = arith.constant dense<0.000000e+00> : vector<32xf32>
    %380 = vector.multi_reduction <add>, %379, %cst_158 [0, 1] : vector<2x8x32xf32> to vector<32xf32>
    %381 = vector.shape_cast %380 : vector<32xf32> to vector<1x1x32xf32>
    %cst_159 = arith.constant 1.600000e+01 : f32
    %382 = vector.broadcast %cst_159 : f32 to vector<1x1x32xf32>
    %383 = arith.divf %381, %382 : vector<1x1x32xf32>
    %384 = vector.broadcast %383 : vector<1x1x32xf32> to vector<2x8x32xf32>
    %385 = arith.subf %379, %384 : vector<2x8x32xf32>
    %386 = arith.mulf %385, %385 : vector<2x8x32xf32>
    %cst_160 = arith.constant dense<0.000000e+00> : vector<32xf32>
    %387 = vector.multi_reduction <add>, %386, %cst_160 [0, 1] : vector<2x8x32xf32> to vector<32xf32>
    %388 = vector.shape_cast %387 : vector<32xf32> to vector<1x1x32xf32>
    %cst_161 = arith.constant 1.600000e+01 : f32
    %389 = vector.broadcast %cst_161 : f32 to vector<1x1x32xf32>
    %390 = arith.divf %388, %389 : vector<1x1x32xf32>
    %391 = vector.broadcast %383 : vector<1x1x32xf32> to vector<2x8x32xf32>
    %392 = arith.subf %379, %391 : vector<2x8x32xf32>
    %cst_162 = arith.constant 9.99999974E-6 : f32
    %393 = vector.broadcast %cst_162 : f32 to vector<1x1x32xf32>
    %394 = arith.addf %390, %393 : vector<1x1x32xf32>
    %395 = math.rsqrt %394 : vector<1x1x32xf32>
    %396 = vector.broadcast %395 : vector<1x1x32xf32> to vector<2x8x32xf32>
    %397 = arith.mulf %392, %396 : vector<2x8x32xf32>
    %c1_163 = arith.constant 1 : index
    %c0_164 = arith.constant 0 : index
    %c0_165 = arith.constant 0 : index
    %398 = vector.load %arg14[%c1_163, %c0_164, %c0_165] : memref<2x1x32xf32, #tpu.memory_space<vmem>>, vector<1x1x32xf32>
    %399 = vector.shape_cast %398 : vector<1x1x32xf32> to vector<1x32xf32>
    %400 = vector.shape_cast %399 : vector<1x32xf32> to vector<1x1x32xf32>
    %401 = vector.broadcast %400 : vector<1x1x32xf32> to vector<2x8x32xf32>
    %402 = arith.mulf %397, %401 : vector<2x8x32xf32>
    %c1_166 = arith.constant 1 : index
    %c0_167 = arith.constant 0 : index
    %c0_168 = arith.constant 0 : index
    %403 = vector.load %arg15[%c1_166, %c0_167, %c0_168] : memref<2x1x32xf32, #tpu.memory_space<vmem>>, vector<1x1x32xf32>
    %404 = vector.shape_cast %403 : vector<1x1x32xf32> to vector<1x32xf32>
    %405 = vector.shape_cast %404 : vector<1x32xf32> to vector<1x1x32xf32>
    %406 = vector.broadcast %405 : vector<1x1x32xf32> to vector<2x8x32xf32>
    %407 = arith.addf %402, %406 : vector<2x8x32xf32>
    %c0_169 = arith.constant 0 : index
    %c0_170 = arith.constant 0 : index
    %c0_171 = arith.constant 0 : index
    %408 = vector.load %arg16[%c0_169, %c0_170, %c0_171] : memref<2x8x32xf32, #tpu.memory_space<vmem>>, vector<2x8x32xf32>
    tpu.vector_store %arg16[%c0_169, %c0_170, %c0_171], %407 {strides = array<i32>} : memref<2x8x32xf32, #tpu.memory_space<vmem>>, vector<2x8x32xf32>,
    %cst_172 = arith.constant dense<0.000000e+00> : vector<2x32xf32>
    %409 = vector.multi_reduction <add>, %407, %cst_172 [1] : vector<2x8x32xf32> to vector<2x32xf32>
    %cst_173 = arith.constant 8.000000e+00 : f32
    %410 = vector.broadcast %cst_173 : f32 to vector<2x32xf32>
    %411 = arith.divf %409, %410 : vector<2x32xf32>
    %c0_174 = arith.constant 0 : index
    %c0_175 = arith.constant 0 : index
    %412 = vector.load %arg17[%c0_174, %c0_175] : memref<2x32xf32, #tpu.memory_space<vmem>>, vector<2x32xf32>
    tpu.vector_store %arg17[%c0_174, %c0_175], %411 {strides = array<i32>} : memref<2x32xf32, #tpu.memory_space<vmem>>, vector<2x32xf32>,
    return
  }
}

</mosaic_0001>

<bundles_post_ra>
// kernel: _transformer_encoder.1
= control target key start
LH: loop header
LB: loop body
LE: loop exit
PB: predicated region body
PF: predicated region fallthrough
CT: control target
= control target key end

     0   :  { %s6054_s0 = inlined_call_operand.vmem [shape: f32[2,8,6], index: 0, kind: input, shape index: {}]   ;;  %s6055_s1 = inlined_call_operand.hbm [shape: f32[2,8,8], index: 1, kind: input, shape index: {}]   ;;  %s6056_s2 = inlined_call_operand.hbm [shape: f32[6,32], index: 2, kind: input, shape index: {}]   ;;  %s6057_s3 = inlined_call_operand.vmem [shape: f32[1,32], index: 3, kind: input, shape index: {}]   ;;  %s6058_s4 = inlined_call_operand.vmem [shape: f32[2,32,32], index: 4, kind: input, shape index: {}]   ;;  %s6059_s5 = inlined_call_operand.vmem [shape: f32[2,32,32], index: 5, kind: input, shape index: {}]   ;;  %s6060_s6 = inlined_call_operand.vmem [shape: f32[2,32,32], index: 6, kind: input, shape index: {}]   ;;  %s6061_s7 = inlined_call_operand.hbm [shape: f32[2,32,32], index: 7, kind: input, shape index: {}]   ;;  %s6062_s8 = inlined_call_operand.vmem [shape: f32[2,1,32], index: 8, kind: input, shape index: {}]   ;;  %s6063_s9 = inlined_call_operand.vmem [shape: f32[2,1,32], index: 9, kind: input, shape index: {}]   ;;  %s6064_s10 = inlined_call_operand.hbm [shape: f32[2,32,64], index: 10, kind: input, shape index: {}]   ;;  %s6065_s11 = inlined_call_operand.hbm [shape: f32[2,1,64], index: 11, kind: input, shape index: {}]   ;;  %s6066_s12 = inlined_call_operand.vmem [shape: f32[2,64,32], index: 12, kind: input, shape index: {}]   ;;  %s6067_s13 = inlined_call_operand.hbm [shape: f32[2,1,32], index: 13, kind: input, shape index: {}]   ;;  %s6068_s14 = inlined_call_operand.hbm [shape: f32[2,1,32], index: 14, kind: input, shape index: {}]   ;;  %s6069_s15 = inlined_call_operand.hbm [shape: f32[2,1,32], index: 15, kind: input, shape index: {}]   ;;  %s6070_s16 = inlined_call_operand.hbm [shape: f32[2,8,32], index: 16, kind: output, shape index: {0}]   ;;  %s6071_s17 = inlined_call_operand.hbm [shape: f32[2,32], index: 17, kind: output, shape index: {1}]  }
   0x1   :  { %6076 = sst [smem:[#allocation26_spill]] %s6054_s0 }
   0x2   :  { %6077 = sst [smem:[#allocation27_spill]] %s6055_s1 }
   0x3   :  { %23 = vsyncpa [#allocation3], 0 }
   0x4   :  { %24 = vsyncpa [#allocation6], 0 }
   0x5   :  { %25 = vsyncpa [#allocation9], 0 }
   0x6   :  { %26 = vsyncpa [#allocation12], 0 }
   0x7   :  { %27 = vsyncpa [#allocation15], 0 }
   0x8   :  { %28 = vsyncpa [#allocation4], 0 }
   0x9   :  { %29 = vsyncpa [#allocation18], 0  ;;  %s5229_s24 = smov [#allocation5]   ;;  %s4995_s28 = scalar_lea.hbm %s6056_s2, 128 }
   0xa   :  { %s50_s25 = sshll.u32 %s5229_s24, 4  ;;  %p4996_p0 = scmp.ne.s32.totalorder %s6056_s2, %s4995_s28  ;;  %s51_s25 = int_to_ptr.vmem [resolvable:$true] %s50_s25 }
   0xb   :  { %p4999_p1 = scmp.lt.u32.totalorder %s4995_s28, %s6056_s2 }
   0xd   :  { %p5001_p2 = pnand %p4999_p1, %p4996_p0 }
   0xf   :  { %5004 = shalt.err (!%p5001_p2)
}
  0x10   :  { %s5005_s19 = scalar_lea.vmem %s51_s25, 128  ;;  %p5010_p4 = scmp.lt.s32.totalorder %s51_s25, %s51_s25 }
  0x11   :  { %p5006_p3 = scmp.ne.s32.totalorder %s51_s25, %s5005_s19  ;;  %p5011_p5 = scmp.lt.s32.totalorder %s5005_s19, %s5005_s19 }
  0x13   :  { %p5012_p6 = por %p5011_p5, %p5010_p4 }
  0x15   :  { %p5013_p7 = pnand %p5012_p6, %p5006_p3 }
  0x17   :  { %5016 = shalt.err (!%p5013_p7)
}
  0x18   :  { %53 = dma.hbm_to_vmem [thread:$0]  %s6056_s2, 128, %s51_s25, [#allocation6]  }
  0x19   :  { %s5230_s21 = smov [#allocation8]   ;;  %s5017_s26 = scalar_lea.hbm %s6064_s10, 1024 }
  0x1a   :  { %s83_s22 = sshll.u32 %s5230_s21, 4  ;;  %p5018_p8 = scmp.ne.s32.totalorder %s6064_s10, %s5017_s26  ;;  %s84_s22 = int_to_ptr.vmem [resolvable:$true] %s83_s22 }
  0x1b   :  { %p5021_p9 = scmp.lt.u32.totalorder %s5017_s26, %s6064_s10 }
  0x1d   :  { %p5023_p10 = pnand %p5021_p9, %p5018_p8 }
  0x1f   :  { %5026 = shalt.err (!%p5023_p10)
}
  0x20   :  { %s5027_s30 = scalar_lea.vmem %s84_s22, 1024  ;;  %p5032_p12 = scmp.lt.s32.totalorder %s84_s22, %s84_s22 }
  0x21   :  { %p5028_p11 = scmp.ne.s32.totalorder %s84_s22, %s5027_s30  ;;  %p5033_p13 = scmp.lt.s32.totalorder %s5027_s30, %s5027_s30 }
  0x23   :  { %p5034_p0 = por %p5033_p13, %p5032_p12 }
  0x25   :  { %p5035_p1 = pnand %p5034_p0, %p5028_p11 }
  0x27   :  { %5038 = shalt.err (!%p5035_p1)
}
  0x28   :  { %s5231_s2 = smov 128   ;;  %s5232_s25 = smov 8  }
  0x29   :  { %89 = dma.hbm_to_vmem [thread:$0]  %s6064_s10, 1024, %s84_s22, [#allocation9], %s5231_s2, %s5231_s2, %s5232_s25  }
  0x2a   :  { %s5233_s1 = smov [#allocation11]   ;;  %s5234_s21 = smov [#allocation2]  }
  0x2b   :  { %s109_s20 = sshll.u32 %s5233_s1, 4  ;;  %s37_s23 = sshll.u32 %s5234_s21, 4  ;;  %s110_s20 = int_to_ptr.vmem [resolvable:$true] %s109_s20  ;;  %s5362_s23 = int_to_ptr.vmem [resolvable:$true] %s37_s23 }
  0x2c   :  { %s5039_s27 = scalar_lea.hbm %s6067_s13, 32 }
  0x2d   :  { %p5040_p2 = scmp.ne.s32.totalorder %s6067_s13, %s5039_s27  ;;  %p5043_p3 = scmp.lt.u32.totalorder %s5039_s27, %s6067_s13 }
  0x2f   :  { %p5045_p4 = pnand %p5043_p3, %p5040_p2 }
  0x31   :  { %5048 = shalt.err (!%p5045_p4)
}
  0x32   :  { %s5049_s10 = scalar_lea.vmem %s110_s20, 32  ;;  %p5054_p6 = scmp.lt.s32.totalorder %s110_s20, %s110_s20 }
  0x33   :  { %p5050_p5 = scmp.ne.s32.totalorder %s110_s20, %s5049_s10  ;;  %p5055_p7 = scmp.lt.s32.totalorder %s5049_s10, %s5049_s10 }
  0x35   :  { %p5056_p8 = por %p5055_p7, %p5054_p6 }
  0x37   :  { %p5057_p9 = pnand %p5056_p8, %p5050_p5 }
  0x39   :  { %5060 = shalt.err (!%p5057_p9)
}
  0x3a   :  { %s6074_s22 = smov 16   ;;  %s5236_s18 = smov 1  }
  0x3b   :  { %115 = dma.hbm_to_vmem [thread:$0]  %s6067_s13, 32, %s110_s20, [#allocation12], %s6074_s22, %s6074_s22, %s5236_s18  }
  0x3c   :  { %s6078_s26 = sld [smem:[#allocation27_spill]] }
  0x42   :  { %s5061_s27 = scalar_lea.hbm %s6078_s26, 256 }
  0x43   :  { %p5062_p10 = scmp.ne.s32.totalorder %s6078_s26, %s5061_s27  ;;  %p5065_p11 = scmp.lt.u32.totalorder %s5061_s27, %s6078_s26 }
  0x45   :  { %p5067_p12 = pnand %p5065_p11, %p5062_p10 }
  0x47   :  { %5070 = shalt.err (!%p5067_p12)
}
  0x48   :  { %s5071_s10 = scalar_lea.vmem %s5362_s23, 256  ;;  %p5076_p0 = scmp.lt.s32.totalorder %s5362_s23, %s5362_s23 }
  0x49   :  { %p5072_p13 = scmp.ne.s32.totalorder %s5362_s23, %s5071_s10  ;;  %p5077_p1 = scmp.lt.s32.totalorder %s5071_s10, %s5071_s10 }
  0x4b   :  { %p5078_p2 = por %p5077_p1, %p5076_p0 }
  0x4d   :  { %p5079_p3 = pnand %p5078_p2, %p5072_p13 }
  0x4f   :  { %5082 = shalt.err (!%p5079_p3)
}
  0x50   :  { %43 = dma.hbm_to_vmem [thread:$0]  %s6078_s26, 256, %s5362_s23, [#allocation3], %s5231_s2, %s5231_s2, %s5232_s25  }
  0x51   :  { %s5237_s19 = smov [#allocation7]   ;;  %s5238_s21 = smov [#allocation10]  }
  0x52   :  { %s67_s1 = sshll.u32 %s5237_s19, 4  ;;  %s95_s24 = sshll.u32 %s5238_s21, 4  ;;  %s68_s1 = int_to_ptr.vmem [resolvable:$true] %s67_s1  ;;  %s5399_s24 = int_to_ptr.vmem [resolvable:$true] %s95_s24 }
  0x53   :  { %s5083_s29 = scalar_lea.hbm %s6061_s7, 1024 }
  0x54   :  { %p5084_p4 = scmp.ne.s32.totalorder %s6061_s7, %s5083_s29  ;;  %p5087_p5 = scmp.lt.u32.totalorder %s5083_s29, %s6061_s7 }
  0x56   :  { %p5089_p6 = pnand %p5087_p5, %p5084_p4 }
  0x58   :  { %5092 = shalt.err (!%p5089_p6)
}
  0x59   :  { %s5093_s23 = scalar_lea.vmem %s68_s1, 1024  ;;  %p5098_p8 = scmp.lt.s32.totalorder %s68_s1, %s68_s1 }
  0x5a   :  { %p5094_p7 = scmp.ne.s32.totalorder %s68_s1, %s5093_s23  ;;  %p5099_p9 = scmp.lt.s32.totalorder %s5093_s23, %s5093_s23 }
  0x5c   :  { %p5100_p10 = por %p5099_p9, %p5098_p8 }
  0x5e   :  { %p5101_p11 = pnand %p5100_p10, %p5094_p7 }
  0x60   :  { %5104 = shalt.err (!%p5101_p11)
}
  0x61   :  { %73 = dma.hbm_to_vmem [thread:$0]  %s6061_s7, 1024, %s68_s1, [#allocation6], %s5231_s2, %s5231_s2, %s5232_s25  }
  0x62   :  { %s5105_s22 = scalar_lea.hbm %s6065_s11, 32 }
  0x63   :  { %p5106_p12 = scmp.ne.s32.totalorder %s6065_s11, %s5105_s22  ;;  %p5109_p13 = scmp.lt.u32.totalorder %s5105_s22, %s6065_s11 }
  0x65   :  { %p5111_p0 = pnand %p5109_p13, %p5106_p12 }
  0x67   :  { %5114 = shalt.err (!%p5111_p0)
}
  0x68   :  { %s5115_s0 = scalar_lea.vmem %s5399_s24, 32  ;;  %p5120_p2 = scmp.lt.s32.totalorder %s5399_s24, %s5399_s24 }
  0x69   :  { %p5116_p1 = scmp.ne.s32.totalorder %s5399_s24, %s5115_s0  ;;  %p5121_p3 = scmp.lt.s32.totalorder %s5115_s0, %s5115_s0 }
  0x6b   :  { %p5122_p4 = por %p5121_p3, %p5120_p2 }
  0x6d   :  { %p5123_p5 = pnand %p5122_p4, %p5116_p1 }
  0x6f   :  { %5126 = shalt.err (!%p5123_p5)
}
  0x70   :  { %s6079_s7 = smov 16   ;;  %s5239_s10 = smov [#allocation13]  }
  0x71   :  { %101 = dma.hbm_to_vmem [thread:$0]  %s6065_s11, 32, %s5399_s24, [#allocation9], %s6079_s7, %s6079_s7, %s5236_s18  }
  0x72   :  { %s121_s23 = sshll.u32 %s5239_s10, 4  ;;  %s5240_s26 = smov [#allocation14]   ;;  %s122_s23 = int_to_ptr.vmem [resolvable:$true] %s121_s23 }
  0x73   :  { %s133_s13 = sshll.u32 %s5240_s26, 4  ;;  %s5127_s22 = scalar_lea.hbm %s6068_s14, 32  ;;  %s5436_s13 = int_to_ptr.vmem [resolvable:$true] %s133_s13 }
  0x74   :  { %p5128_p6 = scmp.ne.s32.totalorder %s6068_s14, %s5127_s22  ;;  %p5131_p7 = scmp.lt.u32.totalorder %s5127_s22, %s6068_s14 }
  0x76   :  { %p5133_p8 = pnand %p5131_p7, %p5128_p6 }
  0x78   :  { %5136 = shalt.err (!%p5133_p8)
}
  0x79   :  { %s5137_s11 = scalar_lea.vmem %s122_s23, 32  ;;  %p5142_p10 = scmp.lt.s32.totalorder %s122_s23, %s122_s23 }
  0x7a   :  { %p5138_p9 = scmp.ne.s32.totalorder %s122_s23, %s5137_s11  ;;  %p5143_p11 = scmp.lt.s32.totalorder %s5137_s11, %s5137_s11 }
  0x7c   :  { %p5144_p12 = por %p5143_p11, %p5142_p10 }
  0x7e   :  { %p5145_p13 = pnand %p5144_p12, %p5138_p9 }
  0x80   :  { %5148 = shalt.err (!%p5145_p13)
}
  0x81   :  { %127 = dma.hbm_to_vmem [thread:$0]  %s6068_s14, 32, %s122_s23, [#allocation12], %s6079_s7, %s6079_s7, %s5236_s18  }
  0x82   :  { %s5149_s10 = scalar_lea.hbm %s6069_s15, 32 }
  0x83   :  { %p5150_p0 = scmp.ne.s32.totalorder %s6069_s15, %s5149_s10  ;;  %p5153_p1 = scmp.lt.u32.totalorder %s5149_s10, %s6069_s15 }
  0x85   :  { %p5155_p2 = pnand %p5153_p1, %p5150_p0 }
  0x87   :  { %5158 = shalt.err (!%p5155_p2)
}
  0x88   :  { %s5159_s21 = scalar_lea.vmem %s5436_s13, 32  ;;  %p5164_p4 = scmp.lt.s32.totalorder %s5436_s13, %s5436_s13 }
  0x89   :  { %p5160_p3 = scmp.ne.s32.totalorder %s5436_s13, %s5159_s21  ;;  %p5165_p5 = scmp.lt.s32.totalorder %s5159_s21, %s5159_s21 }
  0x8b   :  { %p5166_p6 = por %p5165_p5, %p5164_p4 }
  0x8d   :  { %p5167_p7 = pnand %p5166_p6, %p5160_p3 }
  0x8f   :  { %5170 = shalt.err (!%p5167_p7)
}
  0x90   :  { %139 = dma.hbm_to_vmem [thread:$0]  %s6069_s15, 32, %s5436_s13, [#allocation15], %s6079_s7, %s6079_s7, %s5236_s18  }
  0x91   :  { %5215 = dma.done.wait [#allocation3], 256  }
  0x92   :  { %5216 = vsyncadd [#allocation3], 4294967040 }
  0x93   :  { %5217 = dma.done.wait [#allocation6], 1152  }
  0x94   :  { %5218 = vsyncadd [#allocation6], 4294966144 }
  0x95   :  { %5219 = dma.done.wait [#allocation9], 1056  }
  0x96   :  { %5220 = vsyncadd [#allocation9], 4294966240 }
  0x97   :  { %5221 = dma.done.wait [#allocation12], 64  }
  0x98   :  { %5222 = vsyncadd [#allocation12], 4294967232 }
  0x99   :  { %5223 = dma.done.wait [#allocation15], 32  }
  0x9a   :  { %5224 = vsyncadd [#allocation15], 4294967264  ;;  %vm181_vm0 = vcmask 1045504   ;;  %vm174_vm1 = vcmask 48128   ;;  %v166_v0 = vld [vmem:[#allocation5] sm:$0x3f]  ;;  %v266_v27 = vlaneseq }
  0x9b   :  { %s6080_s29 = sld [smem:[#allocation26_spill]]  ;;  %4458 = vmatprep.subr.msk.mxu0 %vm181_vm0, %v166_v0  ;;  %v284_v3 = vld [vmem:[%s6058_s4] sm:$0xff]  ;;  %v285_v4 = vld [vmem:[%s6058_s4 + $0x8] sm:$0xff]  ;;  %v286_v9 = vld [vmem:[%s6058_s4 + $0x10] sm:$0xff]  ;;  %v5241_v18 = vmov 0.0   ;;  %vm288_vm2 = vcmask 261120  }
  0x9c   :  { %v449_v5 = vld [vmem:[%s6060_s6] sm:$0xff]  ;;  %4459 = vmatpush3.msk.msra.mxu0 %vm181_vm0, %v166_v0  ;;  %v4771_v6 = vpack.c.bf16 %v285_v4, %v284_v3  ;;  %v450_v7 = vld [vmem:[%s6060_s6 + $0x8] sm:$0xff]  ;;  %v287_v10 = vld [vmem:[%s6058_s4 + $0x18] sm:$0xff]  ;;  %vm5242_vm3 = vmmov 0   ;;  %v5540_v28 = vand.u32 127, %v266_v27  ;;  %vm686_vm8 = vcmask 64512  }
  0x9d   :  { %v4787_v8 = vpack.c.bf16 %v450_v7, %v449_v5  ;;  %v4775_v11 = vpack.c.bf16 %v287_v10, %v286_v9  ;;  %v451_v12 = vld [vmem:[%s6060_s6 + $0x10] sm:$0xff]  ;;  %v452_v13 = vld [vmem:[%s6060_s6 + $0x18] sm:$0xff]  ;;  %v370_v15 = vld [vmem:[%s6059_s5] sm:$0xff]  ;;  %vm2078_vm15 = vcmask 523264  }
  0x9e   :  { %4772 = vmatprep.subr.bf16.mxu0 %v4771_v6  ;;  %v4791_v14 = vpack.c.bf16 %v452_v13, %v451_v12  ;;  %v371_v16 = vld [vmem:[%s6059_s5 + $0x8] sm:$0xff]  ;;  %v4201_v19 = vld [vmem:[%s6057_s3] ss:$0 sm:$0xff]  ;;  %v372_v21 = vld [vmem:[%s6059_s5 + $0x10] sm:$0xff]  ;;  %vm272_vm4 = vcmp.ge.s32.totalorder %v5540_v28, 8  ;;  %vm273_vm5 = vcmp.lt.s32.totalorder %v5540_v28, 16 }
  0x9f   :  { %4788 = vmatprep.subr.bf16.mxu1 %v4787_v8  ;;  %v4779_v17 = vpack.c.bf16 %v371_v16, %v370_v15  ;;  %v373_v22 = vld [vmem:[%s6059_s5 + $0x18] sm:$0xff]  ;;  %vm269_vm6 = vcmp.lt.s32.totalorder %v5540_v28, 8  ;;  %vm274_vm7 = vmand %vm272_vm4, %vm273_vm5  ;;  %v260_v43 = vld [vmem:[#allocation2] sm:$0xff]  ;;  %vm276_vm9 = vcmp.ge.s32.totalorder %v5540_v28, 16  ;;  %vm277_vm10 = vcmp.lt.s32.totalorder %v5540_v28, 24 }
  0xa0   :  { %4790 = vmatpush3.bf16.msra.mxu1 %v4787_v8  ;;  %v4783_v26 = vpack.c.bf16 %v373_v22, %v372_v21  ;;  %v5554_v33 = vsel %vm269_vm6, 1.0, %v5241_v18  ;;  %v5557_v34 = vsel %vm274_vm7, 1.0, %v5241_v18  ;;  %v5601_v44 = vmul.f32 -1e+11, %v260_v43  ;;  %v5603_v47 = vld [vmem:[#allocation2 + $0x8] sm:$0xff]  ;;  %vm278_vm11 = vmand %vm276_vm9, %vm277_vm10 }
  0xa1   :  { %v164_v1 = vld [vmem:[%s6080_s29] sm:$0xff]  ;;  %v165_v2 = vld [vmem:[%s6080_s29 + $0x8] sm:$0xff]  ;;  %4792 = vmatprep.subr.bf16.mxu1 %v4791_v14  ;;  %v5608_v54 = vmul.f32 -1e+11, %v5603_v47  ;;  %vm280_vm12 = vcmp.ge.s32.totalorder %v5540_v28, 24  ;;  %vm281_vm13 = vcmp.lt.s32.totalorder %v5540_v28, 32 }
  0xa2   :  { %4460 = vmatprep.mubr.msk.f32.mxu0 %vm174_vm1, %v164_v1  ;;  %vm282_vm14 = vmand %vm280_vm12, %vm281_vm13 }
  0xa3   :  { %4461 = vmatmul.mubr.msk.f32.vlgmr.msra.gmra.mrb[0].mxu0 %vm174_vm1, %v165_v2 }
  0xa4   :  { %4774 = vmatpush3.bf16.msra.mxu0 %v4771_v6  ;;  %4794 = vmatpush3.bf16.msra.mxu1 %v4791_v14 }
  0xa5   :  { %4776 = vmatprep.subr.bf16.mxu0 %v4775_v11  ;;  %4506 = vmatprep.subr.mxu1 %v5241_v18 }
  0xa8   :  { %4778 = vmatpush3.bf16.msra.mxu0 %v4775_v11 }
  0xa9   :  { %4780 = vmatprep.subr.bf16.mxu0 %v4779_v17 }
 0x176   :  { %v4462_v20 = vpop.f32.mrb[0].mxu0 }
 0x177   :  { %v251_v23 = vpop.f32.mrb[1].mxu0  ;;  %v5521_v25 = vadd.f32 %v4462_v20, %v4201_v19 }
 0x178   :  { %v5519_v24 = vadd.f32 %v4201_v19, %v251_v23 }
 0x17a   :  { %4471 = vmatprep.mubr.msk.f32.mxu0 %vm288_vm2, %v5519_v24  ;;  %4493 = vmatprep.mubr.msk.f32.mxu1 %vm288_vm2, %v5519_v24 }
 0x17b   :  { %4472 = vmatmul.mubr.msk.f32.vlgmr.msra.gmra.mrb[2].mxu0 %vm288_vm2, %v5521_v25  ;;  %4494 = vmatmul.mubr.msk.f32.vlgmr.msra.gmra.mrb[0].mxu1 %vm288_vm2, %v5521_v25 }
 0x17c   :  { %4782 = vmatpush3.bf16.msra.mxu0 %v4779_v17  ;;  %4482 = vmatprep.mubr.msk.f32.mxu0 %vm288_vm2, %v5519_v24 }
 0x17d   :  { %4784 = vmatprep.subr.bf16.mxu0 %v4783_v26  ;;  %4508 = vmatprep.mubr.msk.f32.mxu1 %vm5242_vm3, %v5241_v18 }
 0x180   :  { %4786 = vmatpush3.bf16.msra.mxu0 %v4783_v26 }
 0x181   :  { %4496 = vmatprep.subr.mxu0 %v5241_v18 }
 0x183   :  { %4483 = vmatmul.mubr.msk.f32.vlgmr.msra.gmra.mrb[4].mxu0 %vm288_vm2, %v5521_v25 }
 0x184   :  { %4498 = vmatprep.mubr.msk.f32.mxu0 %vm5242_vm3, %v5241_v18 }
 0x24e   :  { %v5542_v29 = vpop.f32.mrb[2].mxu0  ;;  %v5544_v30 = vpop.f32.mrb[0].mxu1 }
 0x24f   :  { %v5546_v31 = vpop.f32.mrb[3].mxu0  ;;  %v5548_v32 = vpop.f32.mrb[1].mxu1  ;;  %v529_v40 = vmul.f32 %v5542_v29, %v5554_v33  ;;  %v714_v41 = vmul.f32 %v5542_v29, %v5557_v34  ;;  %v890_v42 = vmul.f32 %v5544_v30, %v5557_v34 }
 0x250   :  { %v528_v37 = vmul.f32 %v5546_v31, %v5554_v33  ;;  %v713_v38 = vmul.f32 %v5546_v31, %v5557_v34  ;;  %v889_v39 = vmul.f32 %v5548_v32, %v5557_v34 }
 0x256   :  { %v5559_v35 = vpop.f32.mrb[4].mxu0 }
 0x257   :  { %v5561_v36 = vpop.f32.mrb[5].mxu0 }
 0x258   :  { %4497 = vmatpush3.xpose.msk.msra.mxu0 %vm288_vm2, %v5561_v36  ;;  %4507 = vmatpush3.xpose.msk.msra.mxu1 %vm288_vm2, %v5561_v36 }
 0x259   :  { %4501 = vmatprep.subr.mxu0 %v5241_v18  ;;  %4516 = vmatprep.subr.mxu1 %v5241_v18 }
 0x25b   :  { %4499 = vmatmul.mubr.msk.f32.vlgmr.msra.gmra.mrb[6].mxu0 %vm288_vm2, %v528_v37  ;;  %4509 = vmatmul.mubr.msk.f32.vlgmr.msra.gmra.mrb[2].mxu1 %vm288_vm2, %v713_v38  ;;  %v5620_v37 = vsub.f32 1.0, %v260_v43  ;;  %v5631_v43 = vsub.f32 1.0, %v5603_v47 }
 0x25c   :  { %4502 = vmatpush3.xpose.msk.msra.mxu0 %vm288_vm2, %v5559_v35  ;;  %4517 = vmatpush3.msra.mxu1 %v889_v39 }
 0x25d   :  { %4503 = vmatprep.mubr.msk.f32.mxu0 %vm5242_vm3, %v5241_v18  ;;  %4511 = vmatprep.subr.mxu0 %v5241_v18 }
 0x25e   :  { %4518 = vmatprep.mubr.msk.f32.mxu1 %vm5242_vm3, %v5241_v18  ;;  %4526 = vmatprep.subr.mxu1 %v5241_v18 }
 0x25f   :  { %4504 = vmatmul.mubr.msk.f32.vlgmr.msra.gmra.mrb[8].mxu0 %vm288_vm2, %v529_v40 }
 0x260   :  { %4512 = vmatpush3.xpose.msk.msra.mxu0 %vm288_vm2, %v5559_v35  ;;  %4513 = vmatprep.mubr.msk.f32.mxu0 %vm5242_vm3, %v5241_v18 }
 0x261   :  { %4521 = vmatprep.subr.mxu0 %v5241_v18 }
 0x263   :  { %4514 = vmatmul.mubr.msk.f32.vlgmr.msra.gmra.mrb[10].mxu0 %vm288_vm2, %v714_v41 }
 0x264   :  { %4522 = vmatpush3.msra.mxu0 %v890_v42  ;;  %4523 = vmatprep.mubr.msk.f32.mxu0 %vm5242_vm3, %v5241_v18 }
 0x265   :  { %4531 = vmatprep.subr.mxu0 %v5241_v18 }
 0x32e   :  { %v602_v45 = vpop.f32.mrb[6].mxu0  ;;  %v784_v46 = vpop.f32.mrb[2].mxu1 }
 0x32f   :  { %v682_v48 = vmul.f32 0.35355338, %v602_v45  ;;  %v861_v49 = vmul.f32 0.35355338, %v784_v46  ;;  %v4500_v50 = vpop.f32.mrb[7].mxu0  ;;  %v4510_v51 = vpop.f32.mrb[3].mxu1  ;;  %v711_v45 = vmul.f32 %v5548_v32, %v5554_v33 }
 0x331   :  { %v863_v52 = vadd.f32 %v861_v49, %v5601_v44  ;;  %v684_v53 = vadd.f32 %v682_v48, %v5601_v44 }
 0x332   :  { %v678_v55 = vpop.f32.mrb[8].mxu0 }
 0x333   :  { %v683_v56 = vmul.f32 0.35355338, %v678_v55  ;;  %v4505_v57 = vpop.f32.mrb[9].mxu0  ;;  %v865_v58 = vsel %vm686_vm8, %v863_v52, -inf  ;;  %v687_v59 = vsel %vm686_vm8, %v684_v53, -inf  ;;  %v712_v55 = vmul.f32 %v5544_v30, %v5554_v33 }
 0x334   :  { %866 = vmax.xlane.f32.xlu0 %v865_v58  ;;  %688 = vmax.xlane.f32.xlu1 %v687_v59 }
 0x335   :  { %v685_v60 = vadd.f32 %v683_v56, %v5608_v54 }
 0x336   :  { %v857_v61 = vpop.f32.mrb[10].mxu0 }
 0x337   :  { %v862_v62 = vmul.f32 0.35355338, %v857_v61  ;;  %v4515_v63 = vpop.f32.mrb[11].mxu0  ;;  %v690_v0 = vsel %vm686_vm8, %v685_v60, -inf }
 0x338   :  { %691 = vmax.xlane.f32.xlu1 %v690_v0 }
 0x339   :  { %v864_v1 = vadd.f32 %v862_v62, %v5608_v54 }
 0x33b   :  { %v868_v2 = vsel %vm686_vm8, %v864_v1, -inf }
 0x33c   :  { %869 = vmax.xlane.f32.xlu0 %v868_v2 }
 0x3c1   :  { %v867_v3 = vpop.xlane.xlu0 %866  ;;  %v689_v4 = vpop.xlane.xlu1 %688 }
 0x3c2   :  { %v871_v5 = vsub.f32 %v863_v52, %v867_v3  ;;  %v693_v6 = vsub.f32 %v684_v53, %v689_v4  ;;  %v5637_v53 = vsel %vm278_vm11, 1.0, %v5241_v18 }
 0x3c3   :  { %v1183_v47 = vmul.f32 %v5546_v31, %v5637_v53  ;;  %v1359_v57 = vmul.f32 %v5548_v32, %v5637_v53  ;;  %v1360_v61 = vmul.f32 %v5544_v30, %v5637_v53 }
 0x3c4   :  { %v873_v7 = vmul.f32 1.442695, %v871_v5  ;;  %v695_v8 = vmul.f32 1.442695, %v693_v6 }
 0x3c5   :  { %v692_v9 = vpop.xlane.xlu1 %691 }
 0x3c6   :  { %4923 = vpow2.f32 %v873_v7  ;;  %v694_v10 = vsub.f32 %v685_v60, %v692_v9  ;;  %v1184_v60 = vmul.f32 %v5542_v29, %v5637_v53 }
 0x3c7   :  { %4925 = vpow2.f32 %v695_v8 }
 0x3c8   :  { %v697_v13 = vmul.f32 1.442695, %v694_v10 }
 0x3c9   :  { %v870_v11 = vpop.xlane.xlu0 %869 }
 0x3ca   :  { %v872_v12 = vsub.f32 %v864_v1, %v870_v11 }
 0x3cc   :  { %v875_v14 = vmul.f32 1.442695, %v872_v12 }
 0x3ce   :  { %4927 = vpow2.f32 %v875_v14 }
 0x3cf   :  { %4929 = vpow2.f32 %v697_v13 }
 0x3d0   :  { %v4924_v15 = vpop.eup %4923 }
 0x3d1   :  { %v877_v16 = vsel %vm686_vm8, %v4924_v15, 0.0  ;;  %v4926_v17 = vpop.eup %4925  ;;  %v883_v39 = vmul.f32 %v4924_v15, %v5620_v37 }
 0x3d2   :  { %878 = vadd.xlane.f32.xlu0 %v877_v16  ;;  %v699_v19 = vsel %vm686_vm8, %v4926_v17, 0.0  ;;  %v705_v48 = vmul.f32 %v4926_v17, %v5620_v37 }
 0x3d6   :  { %700 = vadd.xlane.f32.xlu0 %v699_v19 }
 0x3d8   :  { %v4928_v20 = vpop.eup %4927 }
 0x3d9   :  { %v880_v21 = vsel %vm686_vm8, %v4928_v20, 0.0  ;;  %v4930_v22 = vpop.eup %4929  ;;  %v884_v49 = vmul.f32 %v4928_v20, %v5631_v43 }
 0x3da   :  { %881 = vadd.xlane.f32.xlu1 %v880_v21  ;;  %v702_v23 = vsel %vm686_vm8, %v4930_v22, 0.0  ;;  %v706_v58 = vmul.f32 %v4930_v22, %v5631_v43 }
 0x3de   :  { %703 = vadd.xlane.f32.xlu1 %v702_v23 }
 0x45f   :  { %v879_v26 = vpop.xlane.xlu0 %878 }
 0x460   :  { %4931 = vrcp.f32 %v879_v26  ;;  %v5684_v26 = vsel %vm282_vm14, 1.0, %v5241_v18 }
 0x461   :  { %v1509_v28 = vmul.f32 %v5546_v31, %v5684_v26  ;;  %v1510_v31 = vmul.f32 %v5542_v29, %v5684_v26 }
 0x463   :  { %v701_v27 = vpop.xlane.xlu0 %700 }
 0x464   :  { %4933 = vrcp.f32 %v701_v27  ;;  %v1685_v27 = vmul.f32 %v5548_v32, %v5684_v26  ;;  %v1686_v32 = vmul.f32 %v5544_v30, %v5684_v26 }
 0x467   :  { %v882_v38 = vpop.xlane.xlu1 %881 }
 0x468   :  { %4935 = vrcp.f32 %v882_v38 }
 0x46a   :  { %v4932_v40 = vpop.eup %4931 }
 0x46b   :  { %v887_v41 = vmul.f32 %v4932_v40, %v883_v39  ;;  %v704_v42 = vpop.xlane.xlu1 %703 }
 0x46c   :  { %4937 = vrcp.f32 %v704_v42 }
 0x46d   :  { %4519 = vmatmul.mubr.msk.f32.vlgmr.msra.gmra.mrb[4].mxu1 %vm686_vm8, %v887_v41 }
 0x46e   :  { %4527 = vmatpush3.msra.mxu1 %v711_v45  ;;  %4528 = vmatprep.mubr.msk.f32.mxu1 %vm5242_vm3, %v5241_v18  ;;  %v4934_v46 = vpop.eup %4933 }
 0x46f   :  { %4536 = vmatprep.subr.mxu1 %v5241_v18  ;;  %v709_v51 = vmul.f32 %v4934_v46, %v705_v48 }
 0x472   :  { %v4936_v50 = vpop.eup %4935 }
 0x473   :  { %v888_v52 = vmul.f32 %v4936_v50, %v884_v49 }
 0x475   :  { %4524 = vmatmul.mubr.msk.f32.vlgmr.msra.gmra.mrb[12].mxu0 %vm686_vm8, %v888_v52  ;;  %4529 = vmatmul.mubr.msk.f32.vlgmr.msra.gmra.mrb[4].mxu1 %vm686_vm8, %v709_v51 }
 0x476   :  { %4532 = vmatpush3.msra.mxu0 %v712_v55  ;;  %4537 = vmatpush3.xpose.msk.msra.mxu1 %vm288_vm2, %v5561_v36  ;;  %v4938_v56 = vpop.eup %4937 }
 0x477   :  { %4538 = vmatprep.mubr.msk.f32.mxu1 %vm5242_vm3, %v5241_v18  ;;  %4546 = vmatprep.subr.mxu1 %v5241_v18  ;;  %v710_v59 = vmul.f32 %v4938_v56, %v706_v58 }
 0x478   :  { %4533 = vmatprep.mubr.msk.f32.mxu0 %vm5242_vm3, %v5241_v18  ;;  %4541 = vmatprep.subr.mxu0 %v5241_v18 }
 0x479   :  { %4539 = vmatmul.mubr.msk.f32.vlgmr.msra.gmra.mrb[6].mxu1 %vm288_vm2, %v1183_v47 }
 0x47a   :  { %4547 = vmatpush3.msra.mxu1 %v1359_v57  ;;  %4548 = vmatprep.mubr.msk.f32.mxu1 %vm5242_vm3, %v5241_v18 }
 0x47b   :  { %4556 = vmatprep.subr.mxu1 %v5241_v18 }
 0x47d   :  { %4534 = vmatmul.mubr.msk.f32.vlgmr.msra.gmra.mrb[12].mxu0 %vm686_vm8, %v710_v59 }
 0x47e   :  { %4542 = vmatpush3.xpose.msk.msra.mxu0 %vm288_vm2, %v5559_v35  ;;  %4543 = vmatprep.mubr.msk.f32.mxu0 %vm5242_vm3, %v5241_v18 }
 0x47f   :  { %4551 = vmatprep.subr.mxu0 %v5241_v18 }
 0x481   :  { %4544 = vmatmul.mubr.msk.f32.vlgmr.msra.gmra.mrb[14].mxu0 %vm288_vm2, %v1184_v60 }
 0x482   :  { %4552 = vmatpush3.msra.mxu0 %v1360_v61  ;;  %4553 = vmatprep.mubr.msk.f32.mxu0 %vm5242_vm3, %v5241_v18 }
 0x483   :  { %4561 = vmatprep.subr.mxu0 %v5241_v18 }
 0x54c   :  { %v1254_v62 = vpop.f32.mrb[6].mxu1 }
 0x54d   :  { %v1331_v63 = vmul.f32 0.35355338, %v1254_v62  ;;  %v4540_v0 = vpop.f32.mrb[7].mxu1 }
 0x54f   :  { %v1333_v1 = vadd.f32 %v1331_v63, %v5601_v44 }
 0x551   :  { %v1335_v2 = vsel %vm686_vm8, %v1333_v1, -inf }
 0x552   :  { %1336 = vmax.xlane.f32.xlu0 %v1335_v2 }
 0x554   :  { %v1327_v3 = vpop.f32.mrb[14].mxu0 }
 0x555   :  { %v1332_v4 = vmul.f32 0.35355338, %v1327_v3  ;;  %v4545_v5 = vpop.f32.mrb[15].mxu0 }
 0x556   :  { %v1835_v5 = vld [vmem:[#allocation7] sm:$0xff] }
 0x557   :  { %v1334_v6 = vadd.f32 %v1332_v4, %v5608_v54 }
 0x559   :  { %v1338_v7 = vsel %vm686_vm8, %v1334_v6, -inf }
 0x55a   :  { %1339 = vmax.xlane.f32.xlu1 %v1338_v7 }
 0x5df   :  { %v1337_v8 = vpop.xlane.xlu0 %1336 }
 0x5e0   :  { %v1341_v9 = vsub.f32 %v1333_v1, %v1337_v8  ;;  %v1837_v8 = vld [vmem:[#allocation7 + $0x10] sm:$0xff] }
 0x5e2   :  { %v1343_v10 = vmul.f32 1.442695, %v1341_v9  ;;  %v1838_v9 = vld [vmem:[#allocation7 + $0x18] sm:$0xff] }
 0x5e4   :  { %4939 = vpow2.f32 %v1343_v10  ;;  %v4799_v10 = vpack.c.bf16 %v1838_v9, %v1837_v8  ;;  %v4238_v8 = vld [vmem:[%s6063_s9] ss:$0 sm:$0xff] }
 0x5e7   :  { %v1340_v11 = vpop.xlane.xlu1 %1339 }
 0x5e8   :  { %v1342_v12 = vsub.f32 %v1334_v6, %v1340_v11  ;;  %v1836_v6 = vld [vmem:[#allocation7 + $0x8] sm:$0xff] }
 0x5e9   :  { %v4795_v7 = vpack.c.bf16 %v1836_v6, %v1835_v5  ;;  %v4237_v5 = vld [vmem:[%s6062_s8] ss:$0 sm:$0xff] }
 0x5ea   :  { %v1345_v13 = vmul.f32 1.442695, %v1342_v12 }
 0x5ec   :  { %4941 = vpow2.f32 %v1345_v13 }
 0x5ee   :  { %v4940_v14 = vpop.eup %4939 }
 0x5ef   :  { %v1347_v15 = vsel %vm686_vm8, %v4940_v14, 0.0  ;;  %v1353_v21 = vmul.f32 %v4940_v14, %v5620_v37 }
 0x5f0   :  { %1348 = vadd.xlane.f32.xlu0 %v1347_v15  ;;  %v1969_v15 = vld [vmem:[#allocation8] sm:$0xff] }
 0x5f6   :  { %v4942_v16 = vpop.eup %4941 }
 0x5f7   :  { %v1350_v17 = vsel %vm686_vm8, %v4942_v16, 0.0  ;;  %v1354_v38 = vmul.f32 %v4942_v16, %v5631_v43  ;;  %v1970_v16 = vld [vmem:[#allocation8 + $0x8] sm:$0xff] }
 0x5f8   :  { %1351 = vadd.xlane.f32.xlu1 %v1350_v17  ;;  %v4803_v17 = vpack.c.bf16 %v1970_v16, %v1969_v15  ;;  %v4239_v16 = vld [vmem:[#allocation10] ss:$0 sm:$0xff] }
 0x67d   :  { %v1349_v19 = vpop.xlane.xlu0 %1348 }
 0x67e   :  { %4943 = vrcp.f32 %v1349_v19  ;;  %v1971_v19 = vld [vmem:[#allocation8 + $0x10] sm:$0xff] }
 0x685   :  { %v1352_v20 = vpop.xlane.xlu1 %1351 }
 0x686   :  { %4945 = vrcp.f32 %v1352_v20  ;;  %v1972_v20 = vld [vmem:[#allocation8 + $0x18] sm:$0xff] }
 0x688   :  { %v4944_v22 = vpop.eup %4943 }
 0x689   :  { %v1357_v23 = vmul.f32 %v4944_v22, %v1353_v21  ;;  %v4807_v21 = vpack.c.bf16 %v1972_v20, %v1971_v19  ;;  %v2063_v22 = vld [vmem:[%s6066_s12] sm:$0xff] }
 0x68b   :  { %4549 = vmatmul.mubr.msk.f32.vlgmr.msra.gmra.mrb[4].mxu1 %vm686_vm8, %v1357_v23  ;;  %v2064_v23 = vld [vmem:[%s6066_s12 + $0x8] sm:$0xff] }
 0x68c   :  { %4557 = vmatpush3.xpose.msk.msra.mxu1 %vm288_vm2, %v5561_v36  ;;  %4558 = vmatprep.mubr.msk.f32.mxu1 %vm5242_vm3, %v5241_v18 }
 0x68d   :  { %4566 = vmatprep.subr.mxu1 %v5241_v18 }
 0x68f   :  { %4559 = vmatmul.mubr.msk.f32.vlgmr.msra.gmra.mrb[8].mxu1 %vm288_vm2, %v1509_v28  ;;  %v2065_v28 = vld [vmem:[%s6066_s12 + $0x10] sm:$0xff] }
 0x690   :  { %v4946_v39 = vpop.eup %4945  ;;  %4567 = vmatpush3.msra.mxu1 %v1685_v27  ;;  %4568 = vmatprep.mubr.msk.f32.mxu1 %vm5242_vm3, %v5241_v18  ;;  %v4811_v27 = vpack.c.bf16 %v2064_v23, %v2063_v22 }
 0x691   :  { %v1358_v36 = vmul.f32 %v4946_v39, %v1354_v38  ;;  %4796 = vmatprep.subr.bf16.mxu1 %v4795_v7  ;;  %v2066_v38 = vld [vmem:[%s6066_s12 + $0x18] sm:$0xff] }
 0x692   :  { %v4815_v39 = vpack.c.bf16 %v2066_v38, %v2065_v28  ;;  %v4247_v28 = vld [vmem:[%s6058_s4 + $0x20] sm:$0xff] }
 0x693   :  { %4554 = vmatmul.mubr.msk.f32.vlgmr.msra.gmra.mrb[12].mxu0 %vm686_vm8, %v1358_v36  ;;  %v2067_v36 = vld [vmem:[%s6066_s12 + $0x20] sm:$0xff] }
 0x694   :  { %4562 = vmatpush3.xpose.msk.msra.mxu0 %vm288_vm2, %v5559_v35  ;;  %4563 = vmatprep.mubr.msk.f32.mxu0 %vm5242_vm3, %v5241_v18 }
 0x695   :  { %4571 = vmatprep.subr.mxu0 %v5241_v18 }
 0x697   :  { %4564 = vmatmul.mubr.msk.f32.vlgmr.msra.gmra.mrb[16].mxu0 %vm288_vm2, %v1510_v31  ;;  %v2068_v31 = vld [vmem:[%s6066_s12 + $0x28] sm:$0xff] }
 0x698   :  { %4572 = vmatpush3.msra.mxu0 %v1686_v32  ;;  %4573 = vmatprep.mubr.msk.f32.mxu0 %vm5242_vm3, %v5241_v18  ;;  %v4819_v32 = vpack.c.bf16 %v2068_v31, %v2067_v36  ;;  %v4260_v36 = vld [vmem:[%s6060_s6 + $0x28] sm:$0xff] }
 0x699   :  { %4804 = vmatprep.subr.bf16.mxu0 %v4803_v17 }
 0x762   :  { %v1580_v40 = vpop.f32.mrb[8].mxu1 }
 0x763   :  { %v1657_v41 = vmul.f32 0.35355338, %v1580_v40  ;;  %v4560_v35 = vpop.f32.mrb[9].mxu1 }
 0x765   :  { %v1659_v42 = vadd.f32 %v1657_v41, %v5601_v44 }
 0x767   :  { %v1661_v45 = vsel %vm686_vm8, %v1659_v42, -inf }
 0x768   :  { %1662 = vmax.xlane.f32.xlu0 %v1661_v45 }
 0x76a   :  { %v1653_v29 = vpop.f32.mrb[16].mxu0 }
 0x76b   :  { %v1658_v46 = vmul.f32 0.35355338, %v1653_v29  ;;  %v4565_v48 = vpop.f32.mrb[17].mxu0 }
 0x76d   :  { %v1660_v49 = vadd.f32 %v1658_v46, %v5608_v54 }
 0x76f   :  { %v1664_v30 = vsel %vm686_vm8, %v1660_v49, -inf }
 0x770   :  { %1665 = vmax.xlane.f32.xlu1 %v1664_v30 }
 0x7f5   :  { %v1663_v50 = vpop.xlane.xlu0 %1662 }
 0x7f6   :  { %v1667_v51 = vsub.f32 %v1659_v42, %v1663_v50 }
 0x7f8   :  { %v1669_v52 = vmul.f32 1.442695, %v1667_v51 }
 0x7fa   :  { %4947 = vpow2.f32 %v1669_v52 }
 0x7fd   :  { %v1666_v55 = vpop.xlane.xlu1 %1665 }
 0x7fe   :  { %v1668_v47 = vsub.f32 %v1660_v49, %v1666_v55 }
 0x800   :  { %v1671_v56 = vmul.f32 1.442695, %v1668_v47 }
 0x802   :  { %4949 = vpow2.f32 %v1671_v56 }
 0x804   :  { %v4948_v57 = vpop.eup %4947 }
 0x805   :  { %v1673_v58 = vsel %vm686_vm8, %v4948_v57, 0.0  ;;  %v1679_v63 = vmul.f32 %v4948_v57, %v5620_v37 }
 0x806   :  { %1674 = vadd.xlane.f32.xlu0 %v1673_v58 }
 0x80c   :  { %v4950_v59 = vpop.eup %4949 }
 0x80d   :  { %v1676_v60 = vsel %vm686_vm8, %v4950_v59, 0.0  ;;  %v1680_v2 = vmul.f32 %v4950_v59, %v5631_v43 }
 0x80e   :  { %1677 = vadd.xlane.f32.xlu1 %v1676_v60 }
 0x893   :  { %v1675_v61 = vpop.xlane.xlu0 %1674 }
 0x894   :  { %4951 = vrcp.f32 %v1675_v61 }
 0x89b   :  { %v1678_v62 = vpop.xlane.xlu1 %1677 }
 0x89c   :  { %4953 = vrcp.f32 %v1678_v62 }
 0x89e   :  { %v4952_v0 = vpop.eup %4951 }
 0x89f   :  { %v1683_v1 = vmul.f32 %v4952_v0, %v1679_v63 }
 0x8a1   :  { %4569 = vmatmul.mubr.msk.f32.vlgmr.msra.gmra.mrb[4].mxu1 %vm686_vm8, %v1683_v1 }
 0x8a2   :  { %4798 = vmatpush3.bf16.msra.mxu1 %v4795_v7 }
 0x8a3   :  { %4800 = vmatprep.subr.bf16.mxu1 %v4799_v10 }
 0x8a6   :  { %v4954_v3 = vpop.eup %4953  ;;  %4802 = vmatpush3.bf16.msra.mxu1 %v4799_v10 }
 0x8a7   :  { %v1684_v4 = vmul.f32 %v4954_v3, %v1680_v2  ;;  %4812 = vmatprep.subr.bf16.mxu1 %v4811_v27 }
 0x8a9   :  { %4574 = vmatmul.mubr.msk.f32.vlgmr.msra.gmra.mrb[12].mxu0 %vm686_vm8, %v1684_v4 }
 0x8aa   :  { %4806 = vmatpush3.bf16.msra.mxu0 %v4803_v17 }
 0x8ab   :  { %4808 = vmatprep.subr.bf16.mxu0 %v4807_v21 }
 0x8ae   :  { %4810 = vmatpush3.bf16.msra.mxu0 %v4807_v21 }
 0x974   :  { %v1756_v11 = vpop.f32.mrb[4].mxu1 }
 0x975   :  { %v4570_v12 = vpop.f32.mrb[5].mxu1  ;;  %4584 = vmatprep.mubr.msk.f32.mxu1 %vm288_vm2, %v1756_v11 }
 0x97c   :  { %v1829_v13 = vpop.f32.mrb[12].mxu0 }
 0x97d   :  { %v4575_v14 = vpop.f32.mrb[13].mxu0  ;;  %4585 = vmatmul.mubr.msk.f32.vlgmr.msra.gmra.mrb[10].mxu1 %vm288_vm2, %v1829_v13  ;;  %v2069_v13 = vld [vmem:[%s6066_s12 + $0x30] sm:$0xff] }
 0x97e   :  { %4814 = vmatpush3.bf16.msra.mxu1 %v4811_v27  ;;  %v2070_v14 = vld [vmem:[%s6066_s12 + $0x38] sm:$0xff]  ;;  %v4248_v27 = vld [vmem:[%s6058_s4 + $0x28] sm:$0xff] }
 0x97f   :  { %4816 = vmatprep.subr.bf16.mxu1 %v4815_v39  ;;  %v4823_v15 = vpack.c.bf16 %v2070_v14, %v2069_v13  ;;  %v4827_v38 = vpack.c.bf16 %v4248_v27, %v4247_v28  ;;  %v4256_v28 = vld [vmem:[%s6059_s5 + $0x38] sm:$0xff] }
 0x981   :  { %4828 = vmatprep.subr.bf16.mxu0 %v4827_v38 }
 0x982   :  { %4818 = vmatpush3.bf16.msra.mxu1 %v4815_v39  ;;  %v4259_v39 = vld [vmem:[%s6060_s6 + $0x20] sm:$0xff] }
 0x983   :  { %4820 = vmatprep.subr.bf16.mxu1 %v4819_v32  ;;  %v4843_v31 = vpack.c.bf16 %v4260_v36, %v4259_v39 }
 0x986   :  { %4822 = vmatpush3.bf16.msra.mxu1 %v4819_v32  ;;  %v4249_v32 = vld [vmem:[%s6058_s4 + $0x30] sm:$0xff] }
 0x987   :  { %4824 = vmatprep.subr.bf16.mxu1 %v4823_v15 }
 0x98a   :  { %4826 = vmatpush3.bf16.msra.mxu1 %v4823_v15 }
 0x98b   :  { %4844 = vmatprep.subr.bf16.mxu1 %v4843_v31 }
 0xa50   :  { %v4586_v40 = vpop.f32.mrb[10].mxu1 }
 0xa51   :  { %v1921_v41 = vadd.f32 %v4586_v40, %v5521_v25  ;;  %v1911_v35 = vpop.f32.mrb[11].mxu1  ;;  %v4250_v40 = vld [vmem:[%s6058_s4 + $0x38] sm:$0xff] }
 0xa52   :  { %v1920_v42 = vadd.f32 %v1911_v35, %v5519_v24  ;;  %v4261_v35 = vld [vmem:[%s6060_s6 + $0x30] sm:$0xff] }
 0xa53   :  { %v1923_v45 = vsel %vm288_vm2, %v1921_v41, 0.0 }
 0xa54   :  { %v1922_v29 = vsel %vm288_vm2, %v1920_v42, 0.0 }
 0xa55   :  { %v1924_v46 = vadd.f32 %v1923_v45, %v1922_v29  ;;  %v4253_v29 = vld [vmem:[%s6059_s5 + $0x20] sm:$0xff] }
 0xa57   :  { %v1925_v48 = vrot.slane %v1924_v46, 4 }
 0xa59   :  { %v1926_v49 = vadd.f32 %v1925_v48, %v1924_v46  ;;  %v4254_v46 = vld [vmem:[%s6059_s5 + $0x28] sm:$0xff] }
 0xa5a   :  { %v4835_v48 = vpack.c.bf16 %v4254_v46, %v4253_v29 }
 0xa5b   :  { %v1927_v30 = vrot.slane %v1926_v49, 2 }
 0xa5d   :  { %v1928_v50 = vadd.f32 %v1927_v30, %v1926_v49  ;;  %v4242_v49 = vld [vmem:[#allocation11] ss:$0 sm:$0xff] }
 0xa5f   :  { %v1929_v51 = vrot.slane %v1928_v50, 1 }
 0xa61   :  { %v1930_v52 = vadd.f32 %v1929_v51, %v1928_v50 }
 0xa63   :  { %v1932_v55 = vmul.f32 0.0625, %v1930_v52 }
 0xa65   :  { %v1933_v47 = vsub.f32 %v1920_v42, %v1932_v55  ;;  %v1934_v56 = vsub.f32 %v1921_v41, %v1932_v55  ;;  %v4831_v41 = vpack.c.bf16 %v4250_v40, %v4249_v32  ;;  %v4262_v42 = vld [vmem:[%s6060_s6 + $0x38] sm:$0xff] }
 0xa66   :  { %v4847_v45 = vpack.c.bf16 %v4262_v42, %v4261_v35 }
 0xa67   :  { %v1935_v57 = vmul.f32 %v1933_v47, %v1933_v47  ;;  %v1936_v58 = vmul.f32 %v1934_v56, %v1934_v56 }
 0xa69   :  { %v1937_v25 = vsel %vm288_vm2, %v1935_v57, 0.0  ;;  %v1938_v24 = vsel %vm288_vm2, %v1936_v58, 0.0 }
 0xa6a   :  { %v1939_v59 = vadd.f32 %v1938_v24, %v1937_v25 }
 0xa6c   :  { %v1940_v60 = vrot.slane %v1939_v59, 4 }
 0xa6e   :  { %v1941_v61 = vadd.f32 %v1940_v60, %v1939_v59 }
 0xa70   :  { %v1942_v62 = vrot.slane %v1941_v61, 2 }
 0xa72   :  { %v1943_v63 = vadd.f32 %v1942_v62, %v1941_v61 }
 0xa74   :  { %v1944_v0 = vrot.slane %v1943_v63, 1 }
 0xa76   :  { %v1945_v1 = vadd.f32 %v1944_v0, %v1943_v63 }
 0xa78   :  { %v1946_v2 = vmul.f32 0.0625, %v1945_v1 }
 0xa7a   :  { %v1947_v3 = vadd.f32 1e-05, %v1946_v2 }
 0xa7c   :  { %4955 = vrsqrt.f32 %v1947_v3 }
 0xa86   :  { %v4956_v4 = vpop.eup %4955 }
 0xa87   :  { %v1949_v6 = vmul.f32 %v4956_v4, %v1933_v47  ;;  %v1950_v7 = vmul.f32 %v4956_v4, %v1934_v56 }
 0xa89   :  { %v1958_v9 = vmul.f32 %v4237_v5, %v1949_v6  ;;  %v1959_v10 = vmul.f32 %v4237_v5, %v1950_v7 }
 0xa8b   :  { %v1967_v11 = vadd.f32 %v4238_v8, %v1958_v9  ;;  %v1968_v12 = vadd.f32 %v4238_v8, %v1959_v10 }
 0xa8d   :  { %4595 = vmatprep.mubr.msk.f32.mxu0 %vm288_vm2, %v1967_v11 }
 0xa8e   :  { %4596 = vmatmul.mubr.msk.f32.vlgmr.msra.gmra.mrb[18].mxu0 %vm288_vm2, %v1968_v12 }
 0xa8f   :  { %4830 = vmatpush3.bf16.msra.mxu0 %v4827_v38 }
 0xa90   :  { %4832 = vmatprep.subr.bf16.mxu0 %v4831_v41 }
 0xa93   :  { %4834 = vmatpush3.bf16.msra.mxu0 %v4831_v41 }
 0xa94   :  { %4836 = vmatprep.subr.bf16.mxu0 %v4835_v48 }
 0xb61   :  { %v4597_v17 = vpop.f32.mrb[18].mxu0 }
 0xb62   :  { %v2058_v19 = vadd.f32 %v4597_v17, %v4239_v16  ;;  %v2052_v20 = vpop.f32.mrb[19].mxu0 }
 0xb63   :  { %v2053_v21 = vadd.f32 %v4239_v16, %v2052_v20  ;;  %v4245_v16 = vld [vmem:[#allocation13] ss:$0 sm:$0xff]  ;;  %v4246_v20 = vld [vmem:[#allocation14] ss:$0 sm:$0xff] }
 0xb64   :  { %v2062_v23 = vmax.f32 %v2058_v19, 0.0 }
 0xb65   :  { %v2061_v22 = vmax.f32 %v2053_v21, 0.0 }
 0xb67   :  { %4614 = vmatprep.mubr.msk.f32.mxu1 %vm2078_vm15, %v2061_v22 }
 0xb68   :  { %4615 = vmatmul.mubr.msk.f32.vlgmr.msra.gmra.mrb[12].mxu1 %vm2078_vm15, %v2062_v23  ;;  %v4255_v23 = vld [vmem:[%s6059_s5 + $0x30] sm:$0xff] }
 0xb69   :  { %4846 = vmatpush3.bf16.msra.mxu1 %v4843_v31  ;;  %v4839_v39 = vpack.c.bf16 %v4256_v28, %v4255_v23 }
 0xb6a   :  { %4848 = vmatprep.subr.bf16.mxu1 %v4847_v45 }
 0xb6d   :  { %4850 = vmatpush3.bf16.msra.mxu1 %v4847_v45 }
 0xb6e   :  { %4660 = vmatprep.subr.mxu1 %v5241_v18 }
 0xc3b   :  { %v4616_v30 = vpop.f32.mrb[12].mxu1 }
 0xc3c   :  { %v2157_v50 = vadd.f32 %v4616_v30, %v4242_v49  ;;  %v2151_v51 = vpop.f32.mrb[13].mxu1 }
 0xc3d   :  { %v2152_v52 = vadd.f32 %v4242_v49, %v2151_v51 }
 0xc3e   :  { %v2161_v55 = vadd.f32 %v2157_v50, %v1968_v12 }
 0xc3f   :  { %v2160_v47 = vadd.f32 %v2152_v52, %v1967_v11 }
 0xc40   :  { %v2163_v56 = vsel %vm288_vm2, %v2161_v55, 0.0 }
 0xc41   :  { %v2162_v57 = vsel %vm288_vm2, %v2160_v47, 0.0 }
 0xc42   :  { %v2164_v58 = vadd.f32 %v2163_v56, %v2162_v57 }
 0xc44   :  { %v2165_v25 = vrot.slane %v2164_v58, 4 }
 0xc46   :  { %v2166_v24 = vadd.f32 %v2165_v25, %v2164_v58 }
 0xc48   :  { %v2167_v59 = vrot.slane %v2166_v24, 2 }
 0xc4a   :  { %v2168_v60 = vadd.f32 %v2167_v59, %v2166_v24 }
 0xc4c   :  { %v2169_v61 = vrot.slane %v2168_v60, 1 }
 0xc4e   :  { %v2170_v62 = vadd.f32 %v2169_v61, %v2168_v60 }
 0xc50   :  { %v2171_v63 = vmul.f32 0.0625, %v2170_v62 }
 0xc52   :  { %v2172_v0 = vsub.f32 %v2160_v47, %v2171_v63  ;;  %v2173_v1 = vsub.f32 %v2161_v55, %v2171_v63 }
 0xc54   :  { %v2174_v2 = vmul.f32 %v2172_v0, %v2172_v0  ;;  %v2175_v3 = vmul.f32 %v2173_v1, %v2173_v1 }
 0xc56   :  { %v2176_v4 = vsel %vm288_vm2, %v2174_v2, 0.0  ;;  %v2177_v5 = vsel %vm288_vm2, %v2175_v3, 0.0 }
 0xc57   :  { %v2178_v6 = vadd.f32 %v2177_v5, %v2176_v4 }
 0xc59   :  { %v2179_v7 = vrot.slane %v2178_v6, 4 }
 0xc5b   :  { %v2180_v8 = vadd.f32 %v2179_v7, %v2178_v6 }
 0xc5d   :  { %v2181_v9 = vrot.slane %v2180_v8, 2 }
 0xc5f   :  { %v2182_v10 = vadd.f32 %v2181_v9, %v2180_v8 }
 0xc61   :  { %v2183_v11 = vrot.slane %v2182_v10, 1 }
 0xc63   :  { %v2184_v12 = vadd.f32 %v2183_v11, %v2182_v10 }
 0xc65   :  { %v2185_v13 = vmul.f32 0.0625, %v2184_v12 }
 0xc67   :  { %v2186_v14 = vadd.f32 1e-05, %v2185_v13 }
 0xc69   :  { %4957 = vrsqrt.f32 %v2186_v14 }
 0xc73   :  { %v4958_v15 = vpop.eup %4957 }
 0xc74   :  { %v2188_v17 = vmul.f32 %v4958_v15, %v2172_v0  ;;  %v2189_v19 = vmul.f32 %v4958_v15, %v2173_v1 }
 0xc76   :  { %v2197_v21 = vmul.f32 %v4245_v16, %v2188_v17  ;;  %v2198_v22 = vmul.f32 %v4245_v16, %v2189_v19 }
 0xc78   :  { %v5806_v27 = vadd.f32 %v4246_v20, %v2197_v21  ;;  %v5808_v38 = vadd.f32 %v4246_v20, %v2198_v22 }
 0xc7a   :  { %4625 = vmatprep.mubr.msk.f32.mxu0 %vm288_vm2, %v5806_v27  ;;  %4647 = vmatprep.mubr.msk.f32.mxu1 %vm288_vm2, %v5806_v27 }
 0xc7b   :  { %4626 = vmatmul.mubr.msk.f32.vlgmr.msra.gmra.mrb[20].mxu0 %vm288_vm2, %v5808_v38  ;;  %4648 = vmatmul.mubr.msk.f32.vlgmr.msra.gmra.mrb[14].mxu1 %vm288_vm2, %v5808_v38 }
 0xc7c   :  { %4838 = vmatpush3.bf16.msra.mxu0 %v4835_v48  ;;  %4636 = vmatprep.mubr.msk.f32.mxu0 %vm288_vm2, %v5806_v27 }
 0xc7d   :  { %4840 = vmatprep.subr.bf16.mxu0 %v4839_v39  ;;  %4662 = vmatprep.mubr.msk.f32.mxu1 %vm5242_vm3, %v5241_v18 }
 0xc80   :  { %4842 = vmatpush3.bf16.msra.mxu0 %v4839_v39 }
 0xc81   :  { %4650 = vmatprep.subr.mxu0 %v5241_v18 }
 0xc83   :  { %4637 = vmatmul.mubr.msk.f32.vlgmr.msra.gmra.mrb[22].mxu0 %vm288_vm2, %v5808_v38 }
 0xc84   :  { %4652 = vmatprep.mubr.msk.f32.mxu0 %vm5242_vm3, %v5241_v18 }
 0xd4e   :  { %v5827_v36 = vpop.f32.mrb[20].mxu0  ;;  %v5829_v31 = vpop.f32.mrb[14].mxu1 }
 0xd4f   :  { %v5831_v32 = vpop.f32.mrb[21].mxu0  ;;  %v5833_v40 = vpop.f32.mrb[15].mxu1  ;;  %v2455_v46 = vmul.f32 %v5827_v36, %v5554_v33  ;;  %v2639_v48 = vmul.f32 %v5827_v36, %v5557_v34  ;;  %v2815_v49 = vmul.f32 %v5829_v31, %v5557_v34 }
 0xd50   :  { %v2454_v42 = vmul.f32 %v5831_v32, %v5554_v33  ;;  %v2638_v45 = vmul.f32 %v5831_v32, %v5557_v34  ;;  %v2814_v29 = vmul.f32 %v5833_v40, %v5557_v34 }
 0xd56   :  { %v5835_v41 = vpop.f32.mrb[22].mxu0 }
 0xd57   :  { %v5837_v35 = vpop.f32.mrb[23].mxu0 }
 0xd58   :  { %4651 = vmatpush3.xpose.msk.msra.mxu0 %vm288_vm2, %v5837_v35  ;;  %4661 = vmatpush3.xpose.msk.msra.mxu1 %vm288_vm2, %v5837_v35 }
 0xd59   :  { %4655 = vmatprep.subr.mxu0 %v5241_v18  ;;  %4670 = vmatprep.subr.mxu1 %v5241_v18 }
 0xd5b   :  { %4653 = vmatmul.mubr.msk.f32.vlgmr.msra.gmra.mrb[24].mxu0 %vm288_vm2, %v2454_v42  ;;  %4663 = vmatmul.mubr.msk.f32.vlgmr.msra.gmra.mrb[16].mxu1 %vm288_vm2, %v2638_v45 }
 0xd5c   :  { %4656 = vmatpush3.xpose.msk.msra.mxu0 %vm288_vm2, %v5835_v41  ;;  %4671 = vmatpush3.msra.mxu1 %v2814_v29 }
 0xd5d   :  { %4657 = vmatprep.mubr.msk.f32.mxu0 %vm5242_vm3, %v5241_v18  ;;  %4665 = vmatprep.subr.mxu0 %v5241_v18 }
 0xd5e   :  { %4672 = vmatprep.mubr.msk.f32.mxu1 %vm5242_vm3, %v5241_v18  ;;  %4680 = vmatprep.subr.mxu1 %v5241_v18 }
 0xd5f   :  { %4658 = vmatmul.mubr.msk.f32.vlgmr.msra.gmra.mrb[26].mxu0 %vm288_vm2, %v2455_v46 }
 0xd60   :  { %4666 = vmatpush3.xpose.msk.msra.mxu0 %vm288_vm2, %v5835_v41  ;;  %4667 = vmatprep.mubr.msk.f32.mxu0 %vm5242_vm3, %v5241_v18 }
 0xd61   :  { %4675 = vmatprep.subr.mxu0 %v5241_v18 }
 0xd63   :  { %4668 = vmatmul.mubr.msk.f32.vlgmr.msra.gmra.mrb[28].mxu0 %vm288_vm2, %v2639_v48 }
 0xd64   :  { %4676 = vmatpush3.msra.mxu0 %v2815_v49  ;;  %4677 = vmatprep.mubr.msk.f32.mxu0 %vm5242_vm3, %v5241_v18  ;;  %v2636_v49 = vmul.f32 %v5833_v40, %v5554_v33 }
 0xd65   :  { %4685 = vmatprep.subr.mxu0 %v5241_v18 }
 0xe2e   :  { %v2528_v30 = vpop.f32.mrb[24].mxu0  ;;  %v2709_v50 = vpop.f32.mrb[16].mxu1 }
 0xe2f   :  { %v2608_v51 = vmul.f32 0.35355338, %v2528_v30  ;;  %v2786_v52 = vmul.f32 0.35355338, %v2709_v50  ;;  %v4654_v55 = vpop.f32.mrb[25].mxu0  ;;  %v4664_v47 = vpop.f32.mrb[17].mxu1 }
 0xe31   :  { %v2788_v56 = vadd.f32 %v2786_v52, %v5601_v44  ;;  %v2610_v25 = vadd.f32 %v2608_v51, %v5601_v44 }
 0xe32   :  { %v2604_v57 = vpop.f32.mrb[26].mxu0 }
 0xe33   :  { %v4659_v58 = vpop.f32.mrb[27].mxu0  ;;  %v2790_v34 = vsel %vm686_vm8, %v2788_v56, -inf  ;;  %v2609_v59 = vmul.f32 0.35355338, %v2604_v57  ;;  %v2612_v62 = vsel %vm686_vm8, %v2610_v25, -inf  ;;  %v3108_v57 = vmul.f32 %v5831_v32, %v5637_v53 }
 0xe34   :  { %2791 = vmax.xlane.f32.xlu0 %v2790_v34 }
 0xe35   :  { %v2611_v1 = vadd.f32 %v2609_v59, %v5608_v54  ;;  %v3285_v59 = vmul.f32 %v5829_v31, %v5637_v53 }
 0xe36   :  { %v2782_v24 = vpop.f32.mrb[28].mxu0 }
 0xe37   :  { %v2787_v60 = vmul.f32 0.35355338, %v2782_v24  ;;  %v4669_v61 = vpop.f32.mrb[29].mxu0  ;;  %v2615_v2 = vsel %vm686_vm8, %v2611_v1, -inf  ;;  %v3109_v24 = vmul.f32 %v5827_v36, %v5637_v53 }
 0xe38   :  { %2613 = vmax.xlane.f32.xlu0 %v2612_v62 }
 0xe39   :  { %v2789_v63 = vadd.f32 %v2787_v60, %v5608_v54 }
 0xe3b   :  { %v2793_v0 = vsel %vm686_vm8, %v2789_v63, -inf }
 0xe3c   :  { %2794 = vmax.xlane.f32.xlu1 %v2793_v0 }
 0xe40   :  { %2616 = vmax.xlane.f32.xlu1 %v2615_v2 }
 0xec1   :  { %v2792_v3 = vpop.xlane.xlu0 %2791 }
 0xec2   :  { %v2796_v4 = vsub.f32 %v2788_v56, %v2792_v3  ;;  %v2637_v56 = vmul.f32 %v5829_v31, %v5554_v33  ;;  %v3284_v33 = vmul.f32 %v5833_v40, %v5637_v53 }
 0xec4   :  { %v2798_v5 = vmul.f32 1.442695, %v2796_v4 }
 0xec5   :  { %v2614_v6 = vpop.xlane.xlu0 %2613 }
 0xec6   :  { %4959 = vpow2.f32 %v2798_v5  ;;  %v2618_v7 = vsub.f32 %v2610_v25, %v2614_v6 }
 0xec8   :  { %v2620_v8 = vmul.f32 1.442695, %v2618_v7 }
 0xec9   :  { %v2795_v9 = vpop.xlane.xlu1 %2794 }
 0xeca   :  { %4961 = vpow2.f32 %v2620_v8  ;;  %v2797_v10 = vsub.f32 %v2789_v63, %v2795_v9 }
 0xecc   :  { %v2800_v11 = vmul.f32 1.442695, %v2797_v10 }
 0xecd   :  { %v2617_v12 = vpop.xlane.xlu1 %2616 }
 0xece   :  { %4963 = vpow2.f32 %v2800_v11  ;;  %v2619_v13 = vsub.f32 %v2611_v1, %v2617_v12 }
 0xed0   :  { %v4960_v14 = vpop.eup %4959  ;;  %v2622_v15 = vmul.f32 1.442695, %v2619_v13 }
 0xed1   :  { %v2802_v16 = vsel %vm686_vm8, %v4960_v14, 0.0  ;;  %v2808_v45 = vmul.f32 %v4960_v14, %v5620_v37 }
 0xed2   :  { %4965 = vpow2.f32 %v2622_v15  ;;  %2803 = vadd.xlane.f32.xlu0 %v2802_v16 }
 0xed4   :  { %v4962_v17 = vpop.eup %4961 }
 0xed5   :  { %v2624_v19 = vsel %vm686_vm8, %v4962_v17, 0.0  ;;  %v2630_v50 = vmul.f32 %v4962_v17, %v5620_v37 }
 0xed6   :  { %2625 = vadd.xlane.f32.xlu0 %v2624_v19 }
 0xed8   :  { %v4964_v20 = vpop.eup %4963 }
 0xed9   :  { %v2805_v21 = vsel %vm686_vm8, %v4964_v20, 0.0  ;;  %v2809_v51 = vmul.f32 %v4964_v20, %v5631_v43 }
 0xeda   :  { %2806 = vadd.xlane.f32.xlu1 %v2805_v21  ;;  %v3434_v21 = vmul.f32 %v5831_v32, %v5684_v26  ;;  %v3435_v32 = vmul.f32 %v5827_v36, %v5684_v26 }
 0xedc   :  { %v4966_v22 = vpop.eup %4965 }
 0xedd   :  { %v2627_v23 = vsel %vm686_vm8, %v4966_v22, 0.0  ;;  %v2631_v34 = vmul.f32 %v4966_v22, %v5631_v43  ;;  %v3610_v22 = vmul.f32 %v5833_v40, %v5684_v26  ;;  %v3611_v40 = vmul.f32 %v5829_v31, %v5684_v26 }
 0xede   :  { %2628 = vadd.xlane.f32.xlu1 %v2627_v23 }
 0xf5f   :  { %v2804_v28 = vpop.xlane.xlu0 %2803 }
 0xf60   :  { %4967 = vrcp.f32 %v2804_v28 }
 0xf63   :  { %v2626_v39 = vpop.xlane.xlu0 %2625 }
 0xf64   :  { %4969 = vrcp.f32 %v2626_v39 }
 0xf67   :  { %v2807_v42 = vpop.xlane.xlu1 %2806 }
 0xf68   :  { %4971 = vrcp.f32 %v2807_v42 }
 0xf6a   :  { %v4968_v29 = vpop.eup %4967 }
 0xf6b   :  { %v2812_v46 = vmul.f32 %v4968_v29, %v2808_v45  ;;  %v2629_v48 = vpop.xlane.xlu1 %2628 }
 0xf6c   :  { %4973 = vrcp.f32 %v2629_v48 }
 0xf6d   :  { %4673 = vmatmul.mubr.msk.f32.vlgmr.msra.gmra.mrb[18].mxu1 %vm686_vm8, %v2812_v46 }
 0xf6e   :  { %4681 = vmatpush3.msra.mxu1 %v2636_v49  ;;  %4682 = vmatprep.mubr.msk.f32.mxu1 %vm5242_vm3, %v5241_v18  ;;  %v4970_v30 = vpop.eup %4969 }
 0xf6f   :  { %4690 = vmatprep.subr.mxu1 %v5241_v18  ;;  %v2634_v55 = vmul.f32 %v4970_v30, %v2630_v50 }
 0xf72   :  { %v4972_v52 = vpop.eup %4971 }
 0xf73   :  { %v2813_v47 = vmul.f32 %v4972_v52, %v2809_v51 }
 0xf75   :  { %4678 = vmatmul.mubr.msk.f32.vlgmr.msra.gmra.mrb[30].mxu0 %vm686_vm8, %v2813_v47  ;;  %4683 = vmatmul.mubr.msk.f32.vlgmr.msra.gmra.mrb[18].mxu1 %vm686_vm8, %v2634_v55 }
 0xf76   :  { %4686 = vmatpush3.msra.mxu0 %v2637_v56  ;;  %4691 = vmatpush3.xpose.msk.msra.mxu1 %vm288_vm2, %v5837_v35  ;;  %v4974_v58 = vpop.eup %4973 }
 0xf77   :  { %4692 = vmatprep.mubr.msk.f32.mxu1 %vm5242_vm3, %v5241_v18  ;;  %4700 = vmatprep.subr.mxu1 %v5241_v18  ;;  %v2635_v25 = vmul.f32 %v4974_v58, %v2631_v34 }
 0xf78   :  { %4687 = vmatprep.mubr.msk.f32.mxu0 %vm5242_vm3, %v5241_v18  ;;  %4695 = vmatprep.subr.mxu0 %v5241_v18 }
 0xf79   :  { %4693 = vmatmul.mubr.msk.f32.vlgmr.msra.gmra.mrb[20].mxu1 %vm288_vm2, %v3108_v57 }
 0xf7a   :  { %4701 = vmatpush3.msra.mxu1 %v3284_v33  ;;  %4702 = vmatprep.mubr.msk.f32.mxu1 %vm5242_vm3, %v5241_v18 }
 0xf7b   :  { %4710 = vmatprep.subr.mxu1 %v5241_v18 }
 0xf7d   :  { %4688 = vmatmul.mubr.msk.f32.vlgmr.msra.gmra.mrb[30].mxu0 %vm686_vm8, %v2635_v25 }
 0xf7e   :  { %4696 = vmatpush3.xpose.msk.msra.mxu0 %vm288_vm2, %v5835_v41  ;;  %4697 = vmatprep.mubr.msk.f32.mxu0 %vm5242_vm3, %v5241_v18 }
 0xf7f   :  { %4705 = vmatprep.subr.mxu0 %v5241_v18 }
 0xf81   :  { %4698 = vmatmul.mubr.msk.f32.vlgmr.msra.gmra.mrb[32].mxu0 %vm288_vm2, %v3109_v24 }
 0xf82   :  { %4706 = vmatpush3.msra.mxu0 %v3285_v59  ;;  %4707 = vmatprep.mubr.msk.f32.mxu0 %vm5242_vm3, %v5241_v18 }
 0xf83   :  { %4715 = vmatprep.subr.mxu0 %v5241_v18 }
0x104c   :  { %v3179_v60 = vpop.f32.mrb[20].mxu1 }
0x104d   :  { %v3256_v61 = vmul.f32 0.35355338, %v3179_v60  ;;  %v4694_v62 = vpop.f32.mrb[21].mxu1  ;;  %v3761_v60 = vld [vmem:[#allocation7 + $0x20] sm:$0xff] }
0x104f   :  { %v3258_v63 = vadd.f32 %v3256_v61, %v5601_v44  ;;  %v3762_v61 = vld [vmem:[#allocation7 + $0x28] sm:$0xff] }
0x1050   :  { %v4851_v62 = vpack.c.bf16 %v3762_v61, %v3761_v60  ;;  %v4305_v60 = vld [vmem:[%s6066_s12 + $0x78] sm:$0xff] }
0x1051   :  { %v3260_v0 = vsel %vm686_vm8, %v3258_v63, -inf }
0x1052   :  { %3261 = vmax.xlane.f32.xlu0 %v3260_v0  ;;  %v3764_v0 = vld [vmem:[#allocation7 + $0x38] sm:$0xff] }
0x1054   :  { %v3252_v1 = vpop.f32.mrb[32].mxu0 }
0x1055   :  { %v3257_v2 = vmul.f32 0.35355338, %v3252_v1  ;;  %v4699_v3 = vpop.f32.mrb[33].mxu0 }
0x1057   :  { %v3259_v53 = vadd.f32 %v3257_v2, %v5608_v54 }
0x1059   :  { %v3263_v4 = vsel %vm686_vm8, %v3259_v53, -inf }
0x105a   :  { %3264 = vmax.xlane.f32.xlu1 %v3263_v4  ;;  %v3898_v4 = vld [vmem:[#allocation8 + $0x28] sm:$0xff] }
0x10df   :  { %v3262_v5 = vpop.xlane.xlu0 %3261 }
0x10e0   :  { %v3266_v6 = vsub.f32 %v3258_v63, %v3262_v5  ;;  %v3763_v63 = vld [vmem:[#allocation7 + $0x30] sm:$0xff] }
0x10e1   :  { %v4855_v1 = vpack.c.bf16 %v3764_v0, %v3763_v63 }
0x10e2   :  { %v3268_v7 = vmul.f32 1.442695, %v3266_v6  ;;  %v3899_v6 = vld [vmem:[#allocation8 + $0x30] sm:$0xff] }
0x10e4   :  { %4975 = vpow2.f32 %v3268_v7  ;;  %v3900_v7 = vld [vmem:[#allocation8 + $0x38] sm:$0xff] }
0x10e7   :  { %v3265_v8 = vpop.xlane.xlu1 %3264 }
0x10e8   :  { %v3267_v9 = vsub.f32 %v3259_v53, %v3265_v8  ;;  %v3897_v53 = vld [vmem:[#allocation8 + $0x20] sm:$0xff]  ;;  %v4863_v8 = vpack.c.bf16 %v3900_v7, %v3899_v6 }
0x10e9   :  { %v4859_v5 = vpack.c.bf16 %v3898_v4, %v3897_v53 }
0x10ea   :  { %v3270_v10 = vmul.f32 1.442695, %v3267_v9  ;;  %v4298_v9 = vld [vmem:[%s6066_s12 + $0x40] sm:$0xff] }
0x10ec   :  { %4977 = vpow2.f32 %v3270_v10  ;;  %v4299_v10 = vld [vmem:[%s6066_s12 + $0x48] sm:$0xff] }
0x10ee   :  { %v4976_v11 = vpop.eup %4975 }
0x10ef   :  { %v3272_v12 = vsel %vm686_vm8, %v4976_v11, 0.0  ;;  %v3278_v17 = vmul.f32 %v4976_v11, %v5620_v37  ;;  %v4300_v11 = vld [vmem:[%s6066_s12 + $0x50] sm:$0xff] }
0x10f0   :  { %3273 = vadd.xlane.f32.xlu0 %v3272_v12  ;;  %v4867_v12 = vpack.c.bf16 %v4299_v10, %v4298_v9 }
0x10f6   :  { %v4978_v13 = vpop.eup %4977 }
0x10f7   :  { %v3275_v14 = vsel %vm686_vm8, %v4978_v13, 0.0  ;;  %v3279_v23 = vmul.f32 %v4978_v13, %v5631_v43  ;;  %v4301_v13 = vld [vmem:[%s6066_s12 + $0x58] sm:$0xff] }
0x10f8   :  { %3276 = vadd.xlane.f32.xlu1 %v3275_v14  ;;  %v4871_v14 = vpack.c.bf16 %v4301_v13, %v4300_v11 }
0x117d   :  { %v3274_v15 = vpop.xlane.xlu0 %3273 }
0x117e   :  { %4979 = vrcp.f32 %v3274_v15  ;;  %v4302_v15 = vld [vmem:[%s6066_s12 + $0x60] sm:$0xff] }
0x1185   :  { %v3277_v16 = vpop.xlane.xlu1 %3276 }
0x1186   :  { %4981 = vrcp.f32 %v3277_v16  ;;  %v4303_v16 = vld [vmem:[%s6066_s12 + $0x68] sm:$0xff] }
0x1188   :  { %v4980_v19 = vpop.eup %4979 }
0x1189   :  { %v3282_v20 = vmul.f32 %v4980_v19, %v3278_v17  ;;  %v4875_v17 = vpack.c.bf16 %v4303_v16, %v4302_v15 }
0x118b   :  { %4703 = vmatmul.mubr.msk.f32.vlgmr.msra.gmra.mrb[18].mxu1 %vm686_vm8, %v3282_v20 }
0x118c   :  { %4711 = vmatpush3.xpose.msk.msra.mxu1 %vm288_vm2, %v5837_v35  ;;  %4712 = vmatprep.mubr.msk.f32.mxu1 %vm5242_vm3, %v5241_v18 }
0x118d   :  { %4720 = vmatprep.subr.mxu1 %v5241_v18 }
0x118f   :  { %4713 = vmatmul.mubr.msk.f32.vlgmr.msra.gmra.mrb[22].mxu1 %vm288_vm2, %v3434_v21 }
0x1190   :  { %v4982_v28 = vpop.eup %4981  ;;  %4721 = vmatpush3.msra.mxu1 %v3610_v22  ;;  %4722 = vmatprep.mubr.msk.f32.mxu1 %vm5242_vm3, %v5241_v18 }
0x1191   :  { %v3283_v35 = vmul.f32 %v4982_v28, %v3279_v23  ;;  %4852 = vmatprep.subr.bf16.mxu1 %v4851_v62 }
0x1193   :  { %4708 = vmatmul.mubr.msk.f32.vlgmr.msra.gmra.mrb[30].mxu0 %vm686_vm8, %v3283_v35 }
0x1194   :  { %4716 = vmatpush3.xpose.msk.msra.mxu0 %vm288_vm2, %v5835_v41  ;;  %4717 = vmatprep.mubr.msk.f32.mxu0 %vm5242_vm3, %v5241_v18 }
0x1195   :  { %4725 = vmatprep.subr.mxu0 %v5241_v18 }
0x1197   :  { %4718 = vmatmul.mubr.msk.f32.vlgmr.msra.gmra.mrb[34].mxu0 %vm288_vm2, %v3435_v32 }
0x1198   :  { %4726 = vmatpush3.msra.mxu0 %v3611_v40  ;;  %4727 = vmatprep.mubr.msk.f32.mxu0 %vm5242_vm3, %v5241_v18 }
0x1199   :  { %4860 = vmatprep.subr.bf16.mxu0 %v4859_v5 }
0x1262   :  { %v3505_v39 = vpop.f32.mrb[22].mxu1 }
0x1263   :  { %v3582_v42 = vmul.f32 0.35355338, %v3505_v39  ;;  %v4714_v41 = vpop.f32.mrb[23].mxu1 }
0x1265   :  { %v3584_v45 = vadd.f32 %v3582_v42, %v5601_v44 }
0x1267   :  { %v3586_v29 = vsel %vm686_vm8, %v3584_v45, -inf }
0x1268   :  { %3587 = vmax.xlane.f32.xlu0 %v3586_v29 }
0x126a   :  { %v3578_v36 = vpop.f32.mrb[34].mxu0 }
0x126b   :  { %v3583_v46 = vmul.f32 0.35355338, %v3578_v36  ;;  %v4719_v48 = vpop.f32.mrb[35].mxu0 }
0x126d   :  { %v3585_v49 = vadd.f32 %v3583_v46, %v5608_v54 }
0x126f   :  { %v3589_v26 = vsel %vm686_vm8, %v3585_v49, -inf }
0x1270   :  { %3590 = vmax.xlane.f32.xlu1 %v3589_v26 }
0x12f5   :  { %v3588_v31 = vpop.xlane.xlu0 %3587 }
0x12f6   :  { %v3592_v30 = vsub.f32 %v3584_v45, %v3588_v31 }
0x12f8   :  { %v3594_v50 = vmul.f32 1.442695, %v3592_v30 }
0x12fa   :  { %4983 = vpow2.f32 %v3594_v50 }
0x12fd   :  { %v3591_v18 = vpop.xlane.xlu1 %3590 }
0x12fe   :  { %v3593_v51 = vsub.f32 %v3585_v49, %v3591_v18 }
0x1300   :  { %v3596_v52 = vmul.f32 1.442695, %v3593_v51 }
0x1302   :  { %4985 = vpow2.f32 %v3596_v52 }
0x1304   :  { %v4984_v44 = vpop.eup %4983 }
0x1305   :  { %v3598_v55 = vsel %vm686_vm8, %v4984_v44, 0.0  ;;  %v3604_v58 = vmul.f32 %v4984_v44, %v5620_v37 }
0x1306   :  { %3599 = vadd.xlane.f32.xlu0 %v3598_v55 }
0x130c   :  { %v4986_v47 = vpop.eup %4985 }
0x130d   :  { %v3601_v56 = vsel %vm686_vm8, %v4986_v47, 0.0  ;;  %v3605_v25 = vmul.f32 %v4986_v47, %v5631_v43 }
0x130e   :  { %3602 = vadd.xlane.f32.xlu1 %v3601_v56  ;;  %v4292_v56 = vld [vmem:[%s6062_s8 + $0x1] ss:$0 sm:$0xff] }
0x1393   :  { %v3600_v54 = vpop.xlane.xlu0 %3599 }
0x1394   :  { %4987 = vrcp.f32 %v3600_v54 }
0x139b   :  { %v3603_v57 = vpop.xlane.xlu1 %3602 }
0x139c   :  { %4989 = vrcp.f32 %v3603_v57 }
0x139e   :  { %v4988_v33 = vpop.eup %4987 }
0x139f   :  { %v3608_v34 = vmul.f32 %v4988_v33, %v3604_v58  ;;  %v4294_v58 = vld [vmem:[%s6063_s9 + $0x1] ss:$0 sm:$0xff]  ;;  %s5243_s9 = smov [#allocation16]  }
0x13a1   :  { %4723 = vmatmul.mubr.msk.f32.vlgmr.msra.gmra.mrb[18].mxu1 %vm686_vm8, %v3608_v34 }
0x13a2   :  { %4854 = vmatpush3.bf16.msra.mxu1 %v4851_v62  ;;  %v4295_v62 = vld [vmem:[#allocation10 + $0x1] ss:$0 sm:$0xff] }
0x13a3   :  { %4856 = vmatprep.subr.bf16.mxu1 %v4855_v1 }
0x13a6   :  { %v4990_v24 = vpop.eup %4989  ;;  %4858 = vmatpush3.bf16.msra.mxu1 %v4855_v1 }
0x13a7   :  { %v3609_v59 = vmul.f32 %v4990_v24, %v3605_v25  ;;  %4868 = vmatprep.subr.bf16.mxu1 %v4867_v12 }
0x13a9   :  { %4728 = vmatmul.mubr.msk.f32.vlgmr.msra.gmra.mrb[30].mxu0 %vm686_vm8, %v3609_v59  ;;  %v4304_v59 = vld [vmem:[%s6066_s12 + $0x70] sm:$0xff]  ;;  %s4171_s12 = sshll.u32 %s5243_s9, 4  ;;  %s4172_s12 = int_to_ptr.vmem [resolvable:$true] %s4171_s12 }
0x13aa   :  { %4862 = vmatpush3.bf16.msra.mxu0 %v4859_v5  ;;  %v4879_v61 = vpack.c.bf16 %v4305_v60, %v4304_v59  ;;  %s5171_s4 = scalar_lea.vmem %s4172_s12, 256  ;;  %p5176_p9 = scmp.lt.s32.totalorder %s4172_s12, %s4172_s12 }
0x13ab   :  { %4864 = vmatprep.subr.bf16.mxu0 %v4863_v8  ;;  %p5172_p8 = scmp.ne.s32.totalorder %s4172_s12, %s5171_s4  ;;  %p5177_p10 = scmp.lt.s32.totalorder %s5171_s4, %s5171_s4 }
0x13ad   :  { %p5178_p11 = por %p5177_p10, %p5176_p9 }
0x13ae   :  { %4866 = vmatpush3.bf16.msra.mxu0 %v4863_v8 }
0x13af   :  { %p5179_p12 = pnand %p5178_p11, %p5172_p8 }
0x1474   :  { %v3681_v37 = vpop.f32.mrb[18].mxu1 }
0x1475   :  { %v4724_v2 = vpop.f32.mrb[19].mxu1  ;;  %4738 = vmatprep.mubr.msk.f32.mxu1 %vm288_vm2, %v3681_v37 }
0x147c   :  { %v3754_v3 = vpop.f32.mrb[30].mxu0 }
0x147d   :  { %v4729_v43 = vpop.f32.mrb[31].mxu0  ;;  %4739 = vmatmul.mubr.msk.f32.vlgmr.msra.gmra.mrb[24].mxu1 %vm288_vm2, %v3754_v3 }
0x147e   :  { %4870 = vmatpush3.bf16.msra.mxu1 %v4867_v12  ;;  %v4306_v43 = vld [vmem:[#allocation11 + $0x1] ss:$0 sm:$0xff] }
0x147f   :  { %4872 = vmatprep.subr.bf16.mxu1 %v4871_v14 }
0x1482   :  { %4874 = vmatpush3.bf16.msra.mxu1 %v4871_v14 }
0x1483   :  { %4876 = vmatprep.subr.bf16.mxu1 %v4875_v17 }
0x1486   :  { %4878 = vmatpush3.bf16.msra.mxu1 %v4875_v17 }
0x1487   :  { %4880 = vmatprep.subr.bf16.mxu1 %v4879_v61 }
0x148a   :  { %4882 = vmatpush3.bf16.msra.mxu1 %v4879_v61 }
0x1550   :  { %v4740_v19 = vpop.f32.mrb[24].mxu1 }
0x1551   :  { %v3847_v20 = vadd.f32 %v4740_v19, %v5808_v38  ;;  %v3837_v21 = vpop.f32.mrb[25].mxu1 }
0x1552   :  { %v3846_v22 = vadd.f32 %v3837_v21, %v5806_v27 }
0x1553   :  { %v3849_v23 = vsel %vm288_vm2, %v3847_v20, 0.0 }
0x1554   :  { %v3848_v28 = vsel %vm288_vm2, %v3846_v22, 0.0 }
0x1555   :  { %v3850_v35 = vadd.f32 %v3849_v23, %v3848_v28 }
0x1557   :  { %v3851_v32 = vrot.slane %v3850_v35, 4 }
0x1559   :  { %v3852_v40 = vadd.f32 %v3851_v32, %v3850_v35 }
0x155b   :  { %v3853_v39 = vrot.slane %v3852_v40, 2 }
0x155d   :  { %v3854_v42 = vadd.f32 %v3853_v39, %v3852_v40 }
0x155f   :  { %v3855_v41 = vrot.slane %v3854_v42, 1 }
0x1561   :  { %v3856_v45 = vadd.f32 %v3855_v41, %v3854_v42 }
0x1563   :  { %v3857_v29 = vmul.f32 0.0625, %v3856_v45 }
0x1565   :  { %v3858_v36 = vsub.f32 %v3846_v22, %v3857_v29  ;;  %v3859_v46 = vsub.f32 %v3847_v20, %v3857_v29 }
0x1567   :  { %v3860_v48 = vmul.f32 %v3858_v36, %v3858_v36  ;;  %v3861_v49 = vmul.f32 %v3859_v46, %v3859_v46 }
0x1569   :  { %v3862_v38 = vsel %vm288_vm2, %v3860_v48, 0.0  ;;  %v3863_v27 = vsel %vm288_vm2, %v3861_v49, 0.0  ;;  %v4309_v49 = vld [vmem:[#allocation13 + $0x1] ss:$0 sm:$0xff] }
0x156a   :  { %v3864_v26 = vadd.f32 %v3863_v27, %v3862_v38 }
0x156c   :  { %v3865_v31 = vrot.slane %v3864_v26, 4 }
0x156e   :  { %v3866_v30 = vadd.f32 %v3865_v31, %v3864_v26  ;;  %v4310_v26 = vld [vmem:[#allocation14 + $0x1] ss:$0 sm:$0xff] }
0x1570   :  { %v3867_v50 = vrot.slane %v3866_v30, 2 }
0x1572   :  { %v3868_v18 = vadd.f32 %v3867_v50, %v3866_v30 }
0x1574   :  { %v3869_v51 = vrot.slane %v3868_v18, 1 }
0x1576   :  { %v3870_v52 = vadd.f32 %v3869_v51, %v3868_v18 }
0x1578   :  { %v3871_v44 = vmul.f32 0.0625, %v3870_v52 }
0x157a   :  { %v3872_v55 = vadd.f32 1e-05, %v3871_v44 }
0x157c   :  { %4991 = vrsqrt.f32 %v3872_v55 }
0x1586   :  { %v4992_v47 = vpop.eup %4991 }
0x1587   :  { %v3874_v54 = vmul.f32 %v4992_v47, %v3858_v36  ;;  %v3875_v57 = vmul.f32 %v4992_v47, %v3859_v46 }
0x1589   :  { %v3884_v33 = vmul.f32 %v4292_v56, %v3874_v54  ;;  %v3885_v34 = vmul.f32 %v4292_v56, %v3875_v57 }
0x158b   :  { %v3894_v25 = vadd.f32 %v4294_v58, %v3884_v33  ;;  %v3895_v24 = vadd.f32 %v4294_v58, %v3885_v34 }
0x158d   :  { %4749 = vmatprep.mubr.msk.f32.mxu0 %vm288_vm2, %v3894_v25 }
0x158e   :  { %4750 = vmatmul.mubr.msk.f32.vlgmr.msra.gmra.mrb[36].mxu0 %vm288_vm2, %v3895_v24 }
0x1661   :  { %v4751_v63 = vpop.f32.mrb[36].mxu0 }
0x1662   :  { %v3987_v0 = vadd.f32 %v4751_v63, %v4295_v62  ;;  %v3981_v1 = vpop.f32.mrb[37].mxu0 }
0x1663   :  { %v3982_v37 = vadd.f32 %v4295_v62, %v3981_v1 }
0x1664   :  { %v3991_v3 = vmax.f32 %v3987_v0, 0.0 }
0x1665   :  { %v3990_v2 = vmax.f32 %v3982_v37, 0.0 }
0x1667   :  { %4768 = vmatprep.mubr.msk.f32.mxu1 %vm2078_vm15, %v3990_v2 }
0x1668   :  { %4769 = vmatmul.mubr.msk.f32.vlgmr.msra.gmra.mrb[26].mxu1 %vm2078_vm15, %v3991_v3 }
0x173b   :  { %v4770_v53 = vpop.f32.mrb[26].mxu1 }
0x173c   :  { %v4087_v4 = vadd.f32 %v4770_v53, %v4306_v43  ;;  %v4081_v5 = vpop.f32.mrb[27].mxu1 }
0x173d   :  { %v4082_v6 = vadd.f32 %v4306_v43, %v4081_v5 }
0x173e   :  { %v4091_v7 = vadd.f32 %v4087_v4, %v3895_v24 }
0x173f   :  { %v4090_v8 = vadd.f32 %v4082_v6, %v3894_v25 }
0x1740   :  { %v4093_v9 = vsel %vm288_vm2, %v4091_v7, 0.0 }
0x1741   :  { %v4092_v10 = vsel %vm288_vm2, %v4090_v8, 0.0 }
0x1742   :  { %v4094_v11 = vadd.f32 %v4093_v9, %v4092_v10 }
0x1744   :  { %v4095_v12 = vrot.slane %v4094_v11, 4 }
0x1746   :  { %v4096_v13 = vadd.f32 %v4095_v12, %v4094_v11 }
0x1748   :  { %v4097_v14 = vrot.slane %v4096_v13, 2 }
0x174a   :  { %v4098_v15 = vadd.f32 %v4097_v14, %v4096_v13 }
0x174c   :  { %v4099_v16 = vrot.slane %v4098_v15, 1 }
0x174e   :  { %v4100_v17 = vadd.f32 %v4099_v16, %v4098_v15 }
0x1750   :  { %v4101_v19 = vmul.f32 0.0625, %v4100_v17 }
0x1752   :  { %v4102_v20 = vsub.f32 %v4090_v8, %v4101_v19  ;;  %v4103_v21 = vsub.f32 %v4091_v7, %v4101_v19 }
0x1754   :  { %v4104_v22 = vmul.f32 %v4102_v20, %v4102_v20  ;;  %v4105_v23 = vmul.f32 %v4103_v21, %v4103_v21 }
0x1756   :  { %v4106_v28 = vsel %vm288_vm2, %v4104_v22, 0.0  ;;  %v4107_v35 = vsel %vm288_vm2, %v4105_v23, 0.0 }
0x1757   :  { %v4108_v32 = vadd.f32 %v4107_v35, %v4106_v28 }
0x1759   :  { %v4109_v40 = vrot.slane %v4108_v32, 4 }
0x175b   :  { %v4110_v39 = vadd.f32 %v4109_v40, %v4108_v32 }
0x175d   :  { %v4111_v42 = vrot.slane %v4110_v39, 2 }
0x175f   :  { %v4112_v41 = vadd.f32 %v4111_v42, %v4110_v39 }
0x1761   :  { %v4113_v45 = vrot.slane %v4112_v41, 1 }
0x1763   :  { %v4114_v29 = vadd.f32 %v4113_v45, %v4112_v41 }
0x1765   :  { %v4115_v36 = vmul.f32 0.0625, %v4114_v29 }
0x1767   :  { %v4116_v46 = vadd.f32 1e-05, %v4115_v36 }
0x1769   :  { %4993 = vrsqrt.f32 %v4116_v46 }
0x1773   :  { %v4994_v48 = vpop.eup %4993 }
0x1774   :  { %v4118_v38 = vmul.f32 %v4994_v48, %v4102_v20  ;;  %v4119_v27 = vmul.f32 %v4994_v48, %v4103_v21 }
0x1776   :  { %v4128_v31 = vmul.f32 %v4309_v49, %v4118_v38  ;;  %v4129_v30 = vmul.f32 %v4309_v49, %v4119_v27 }
0x1778   :  { %v4138_v50 = vadd.f32 %v4310_v26, %v4128_v31  ;;  %v4139_v18 = vadd.f32 %v4310_v26, %v4129_v30 }
0x177a   :  { %4140 = vst.msk [vmem:[#allocation16] sm:$0xff] %vm288_vm2, %v4138_v50  ;;  %4141 = vst.msk [vmem:[#allocation16 + $0x8] sm:$0xff] %vm288_vm2, %v4139_v18  ;;  %v4142_v51 = vsel %vm288_vm2, %v4138_v50, 0.0  ;;  %v4149_v52 = vsel %vm288_vm2, %v4139_v18, 0.0 }
0x177b   :  { %v4143_v44 = vrot.slane %v4142_v51, 4  ;;  %v4150_v55 = vrot.slane %v4149_v52, 4 }
0x177c   :  { %5182 = shalt.err (!%p5179_p12)
}
0x177d   :  { %s5183_s0 = scalar_lea.hbm %s6070_s16, 256 }
0x177e   :  { %p5184_p13 = scmp.ne.s32.totalorder %s6070_s16, %s5183_s0  ;;  %p5187_p0 = scmp.lt.u32.totalorder %s5183_s0, %s6070_s16 }
0x1780   :  { %p5189_p1 = pnand %p5187_p0, %p5184_p13 }
0x1782   :  { %5192 = shalt.err (!%p5189_p1)
}
0x1783   :  { %4177 = dma.vmem_to_hbm [thread:$0]  %s4172_s12, 256, %s6070_s16, [#allocation4], %s5231_s2, %s5231_s2, %s5232_s25   ;;  %v4144_v47 = vadd.f32 %v4143_v44, %v4142_v51  ;;  %v4151_v56 = vadd.f32 %v4150_v55, %v4149_v52  ;;  %vm4161_vm0 = vcmask 1041409   ;;  %vm4164_vm1 = vcmask 254976  }
0x1784   :  { %s5244_s20 = smov [#allocation17]  }
0x1785   :  { %v4145_v54 = vrot.slane %v4144_v47, 2  ;;  %v4152_v57 = vrot.slane %v4151_v56, 2  ;;  %s4184_s19 = sshll.u32 %s5244_s20, 4  ;;  %s4185_s19 = int_to_ptr.vmem [resolvable:$true] %s4184_s19 }
0x1786   :  { %s5193_s16 = scalar_lea.vmem %s4185_s19, 32  ;;  %p5198_p3 = scmp.lt.s32.totalorder %s4185_s19, %s4185_s19 }
0x1787   :  { %v4146_v58 = vadd.f32 %v4145_v54, %v4144_v47  ;;  %v4153_v33 = vadd.f32 %v4152_v57, %v4151_v56  ;;  %p5194_p2 = scmp.ne.s32.totalorder %s4185_s19, %s5193_s16  ;;  %p5199_p4 = scmp.lt.s32.totalorder %s5193_s16, %s5193_s16 }
0x1789   :  { %v4147_v34 = vrot.slane %v4146_v58, 1  ;;  %v4154_v25 = vrot.slane %v4153_v33, 1  ;;  %p5200_p5 = por %p5199_p4, %p5198_p3 }
0x178b   :  { %v4148_v24 = vadd.f32 %v4147_v34, %v4146_v58  ;;  %v4155_v59 = vadd.f32 %v4154_v25, %v4153_v33  ;;  %p5201_p6 = pnand %p5200_p5, %p5194_p2 }
0x178d   :  { %v4157_v60 = vmul.f32 0.125, %v4148_v24  ;;  %v4158_v61 = vmul.f32 0.125, %v4155_v59 }
0x178f   :  { %v4162_v62 = vsel %vm4161_vm0, %v4158_v61, %v4157_v60 }
0x1790   :  { %4165 = vst.msk [vmem:[#allocation17] sm:$0x3] %vm4164_vm1, %v4162_v62 }
0x1791   :  { %5204 = shalt.err (!%p5201_p6)
}
0x1792   :  { %s5205_s22 = scalar_lea.hbm %s6071_s17, 32 }
0x1793   :  { %p5206_p7 = scmp.ne.s32.totalorder %s6071_s17, %s5205_s22  ;;  %p5209_p8 = scmp.lt.u32.totalorder %s5205_s22, %s6071_s17 }
0x1795   :  { %p5211_p9 = pnand %p5209_p8, %p5206_p7 }
0x1797   :  { %5214 = shalt.err (!%p5211_p9)
}
0x1798   :  { %4187 = dma.vmem_to_hbm [thread:$0]  %s4185_s19, 32, %s6071_s17, [#allocation18]  }
0x1799   :  { %5225 = dma.done.wait [#allocation4], 256  }
0x179a   :  { %5226 = vsyncadd [#allocation4], 4294967040 }
0x179b   :  { %5227 = dma.done.wait [#allocation18], 32  }
0x179c   :  { %5228 = vsyncadd [#allocation18], 4294967264 }
0x179d   :  { %4194 = vsyncpa [#allocation3], 1 }
0x179e   :  { %4195 = vsyncpa [#allocation6], 1 }
0x179f   :  { %4196 = vsyncpa [#allocation9], 1 }
0x17a0   :  { %4197 = vsyncpa [#allocation12], 1 }
0x17a1   :  { %4198 = vsyncpa [#allocation15], 1 }
0x17a2   :  { %4199 = vsyncpa [#allocation4], 1 }
0x17a3   :  { %4200 = vsyncpa [#allocation18], 1 }

</bundles_post_ra>
